<compile_context>
chip_gen: v7x
topology: tpu7x:2x2x1
jax: 0.10.0
libtpu: 0.0.40
codegen_flags: <defaults>
</compile_context>

<pallas_src>
import functools

import jax
import jax.numpy as jnp
from jax.experimental import pallas as pl
from jax.experimental.pallas import tpu as pltpu


def sa_layer_kernel(xq_ref, xkv_ref, wkv_ref, bv_ref, wt_ref, bt_ref,
                    gamma_ref, beta_ref, g_ref, gt_ref,
                    out_ref,
                    q_cm, kv_cm, inv_rs, *opt_scratch,
                    d_tran, nq_real, nkv_real, tq, n_chunks, num_groups,
                    compute_dtype, cache_probs, unroll, approx_recip):
    # xq_ref : (Cin, NQP)   xkv_ref: (Cin, NKP)     (channels-major / NCL)
    # wkv_ref: (2D, Cin)    bv_ref : (D, 1)
    # wt_ref : (Cout, D)    bt_ref : (Cout, 1)
    # gamma/beta: (Cout, 1) g_ref: (Cout, NG)  gt_ref: (NG, Cout)
    # out_ref: (Cout, NQP) f32
    # scratch: q_cm (D, NQP) f32, kv_cm (2D, NKP) cdt, inv_rs (1, NQP) f32,
    #          optional ecache (NKP, NQP) cdt.
    f32 = jnp.float32
    cdt = compute_dtype
    D = d_tran
    Cout, NQP = out_ref.shape
    NKP = kv_cm.shape[1]
    ecache = opt_scratch[0] if cache_probs else None

    std = (((1,), (0,)), ((), ()))   # (m,k) @ (k,n)
    ct0 = (((0,), (0,)), ((), ()))   # (k,m) , (k,n) -> (m,n)   (trans_a form)
    ctt = (((1,), (1,)), ((), ()))   # (m,k) , (n,k) -> (m,n)   (trans_b form)

    # ---- fused projections (channels on sublanes, points on lanes) ----------
    # q_conv / k_conv share their weight -> rows [0, D) of the fused matrix.
    q_cm[...] = jax.lax.dot_general(wkv_ref[pl.ds(0, D), :], xq_ref[...], std,
                                    preferred_element_type=f32)        # (D, NQP)
    # fused [k; v] projection, cast fused into the matmul epilogue (no big f32
    # intermediate kept live); v bias / kscale are applied in place later.
    kv_cm[...] = jax.lax.dot_general(wkv_ref[...], xkv_ref[...], std,
                                     preferred_element_type=f32).astype(cdt)

    # additive key-padding mask (keys sit on the sublane axis of the scores)
    if nkv_real != NKP:
        kmask = jnp.where(
            jax.lax.broadcasted_iota(jnp.int32, (NKP, 1), 0) < nkv_real,
            f32(0.0), f32(-1e30))
    else:
        kmask = None

    def exp_scores(qs):
        """exp(energy - rowmax) for queries [qs, qs+tq), laid out (NKP, tq)."""
        qc = q_cm[:, pl.ds(qs, tq)].astype(cdt)                         # (D, tq)
        e = jax.lax.dot_general(kv_cm[pl.ds(0, D), :], qc, ct0,
                                preferred_element_type=f32)             # (NKP, tq)
        if kmask is not None:
            e = e + kmask
        # per-query softmax numerator; max/sum reduce over the sublane axis
        return jnp.exp(e - jnp.max(e, axis=0, keepdims=True))           # f32

    # ---- pass 1: per-query 1/rowsum + key-axis column sums ------------------
    def pass1_step(it, colsum):
        qs = pl.multiple_of(it * tq, tq)
        p = exp_scores(qs)
        inv_row = pl.reciprocal(jnp.sum(p, axis=0, keepdims=True),
                                approx=approx_recip)                    # (1, tq)
        inv_rs[:, pl.ds(qs, tq)] = inv_row
        if cache_probs:
            ecache[:, pl.ds(qs, tq)] = p.astype(cdt)
        if nq_real != NQP:   # padded queries must not feed the key renorm
            cols = qs + jax.lax.broadcasted_iota(jnp.int32, (1, tq), 1)
            w = jnp.where(cols < nq_real, inv_row, f32(0.0))
        else:
            w = inv_row
        # column sums on the MXU: (1,tq) contracted with (NKP,tq) over tq
        return colsum + jax.lax.dot_general(w, p, ctt,
                                            preferred_element_type=f32)  # (1, NKP)

    colsum = jax.lax.fori_loop(0, n_chunks, pass1_step,
                               jnp.zeros((1, NKP), f32), unroll=unroll)

    # fold the query-axis renorm and the v bias into v once (single D x NKP pass)
    kscale = pl.reciprocal(colsum + 1e-9, approx=approx_recip)          # (1, NKP)
    kv_cm[pl.ds(D, D), :] = (
        (kv_cm[pl.ds(D, D), :].astype(f32) + bv_ref[...]) * kscale).astype(cdt)

    # ---- pass 2: attention @ v, trans_conv, fused GroupNorm statistics ------
    def pass2_step(it, carry):
        csum, csq = carry
        qs = pl.multiple_of(it * tq, tq)
        if cache_probs:
            p_c = ecache[:, pl.ds(qs, tq)]                              # (NKP, tq)
        else:
            p_c = exp_scores(qs).astype(cdt)
        x_rT = jax.lax.dot_general(kv_cm[pl.ds(D, D), :], p_c, std,
                                   preferred_element_type=f32)          # (D, tq)
        x_rT = x_rT * inv_rs[:, pl.ds(qs, tq)]          # row-softmax denominator
        diff = (q_cm[:, pl.ds(qs, tq)] - x_rT).astype(cdt)              # (D, tq)
        t = jax.lax.dot_general(wt_ref[...], diff, std,
                                preferred_element_type=f32) + bt_ref[...]  # (Cout, tq)
        out_ref[:, pl.ds(qs, tq)] = t
        # GroupNorm stats as skinny MXU matvecs; padded queries masked via wvec
        if nq_real != NQP:
            rows = qs + jax.lax.broadcasted_iota(jnp.int32, (tq, 1), 0)
            wvec = jnp.where(rows < nq_real, f32(1.0), f32(0.0))
        else:
            wvec = jnp.full((tq, 1), 1.0, f32)
        csum = csum + jax.lax.dot_general(t, wvec, std,
                                          preferred_element_type=f32)   # (Cout, 1)
        csq = csq + jax.lax.dot_general(t * t, wvec, std,
                                        preferred_element_type=f32)     # (Cout, 1)
        return csum, csq

    chan_sum, chan_sq = jax.lax.fori_loop(
        0, n_chunks, pass2_step,
        (jnp.zeros((Cout, 1), f32), jnp.zeros((Cout, 1), f32)),
        unroll=unroll)

    # ---- GroupNorm finalize: per-group stats -> per-channel affine ----------
    inv_den = f32(1.0 / float(nq_real * (Cout // num_groups)))
    mean_g = jnp.dot(gt_ref[...], chan_sum, preferred_element_type=f32) * inv_den
    ex2_g = jnp.dot(gt_ref[...], chan_sq, preferred_element_type=f32) * inv_den
    # TODO(synk): single-pass E[x^2]-E[x]^2 variance; switch to a centered
    # second sweep if |mean| >> std regimes ever appear.
    inv_std_g = jax.lax.rsqrt(ex2_g - mean_g * mean_g + 1e-5)           # (NG, 1)
    mean_c = jnp.dot(g_ref[...], mean_g, preferred_element_type=f32)    # (Cout, 1)
    scale_c = jnp.dot(g_ref[...], inv_std_g,
                      preferred_element_type=f32) * gamma_ref[...]      # (Cout, 1)
    shift_c = beta_ref[...] - mean_c * scale_c

    # ---- pass 3: normalize + ReLU + residual, chunked over queries ----------
    @pl.loop(0, n_chunks, unroll=unroll)
    def _finalize(it):
        qs = pl.multiple_of(it * tq, tq)
        t = out_ref[:, pl.ds(qs, tq)]
        y = jnp.maximum(t * scale_c + shift_c, f32(0.0))
        out_ref[:, pl.ds(qs, tq)] = q_cm[:, pl.ds(qs, tq)] + y


def _round_up(x, m):
    return ((x + m - 1) // m) * m


def _pick_tq(nqp, q_chunk):
    """Largest multiple of 128 that divides the padded query count and is <= request."""
    req = max(128, _round_up(q_chunk, 128))
    tq, t = 128, 128
    while t <= req and nqp % t == 0:
        tq = t
        t += 128
    return tq


def sa_layer_forward(x_q, x_kv, params, num_groups=4, q_chunk=256,
                     compute_dtype=jnp.bfloat16,
                     prob_cache_bytes=16 * 1024 * 1024):
    """SA_Layer forward.  x_q: (B, Cin, Nq), x_kv: (B, Cin, Nkv) -> (B, Cout, Nq)."""
    B, Cin, Nq = x_q.shape
    Nkv = x_kv.shape[2]
    D = params["w_qk"].shape[0]
    Cout = params["w_t"].shape[0]
    assert Cout == D, "residual add in SA_Layer requires out_channels == d_tran"
    assert Cout % num_groups == 0

    cdt = compute_dtype
    csize = jnp.dtype(cdt).itemsize
    NQP = _round_up(Nq, 128)          # pad queries to 128, not TQ (no waste)
    NKP = _round_up(Nkv, 128)         # lane-dense padded key count
    TQ = _pick_tq(NQP, q_chunk)
    n_chunks = NQP // TQ
    unroll = n_chunks <= 8            # give LLO cross-iteration visibility
    cache_probs = (NKP * NQP * csize) <= prob_cache_bytes
    approx_recip = (cdt != jnp.float32)   # exact divides on the f32 path

    def pad_last(a, target):
        pad = target - a.shape[-1]
        return a if pad == 0 else jnp.pad(a, ((0, 0), (0, 0), (0, pad)))

    # keep the native NCL layout; cast matmul operands to the compute dtype
    xq_p = pad_last(x_q, NQP).astype(cdt)
    xkv_p = pad_last(x_kv, NKP).astype(cdt)

    # fused k/v weight: rows [0, D) = shared q/k weight, rows [D, 2D) = v weight
    w_kv = jnp.concatenate([params["w_qk"], params["w_v"]], axis=0).astype(cdt)
    b_v = params["b_v"].reshape(D, 1).astype(jnp.float32)
    w_t = params["w_t"].astype(cdt)
    b_t = params["b_t"].reshape(Cout, 1).astype(jnp.float32)
    gamma = params["gamma"].reshape(Cout, 1).astype(jnp.float32)
    beta = params["beta"].reshape(Cout, 1).astype(jnp.float32)

    # one-hot channel <-> group matrices for the GroupNorm reductions (inputs,
    # not in-kernel constants).
    ch = jnp.arange(Cout)
    g = (ch[:, None] // (Cout // num_groups) ==
         jnp.arange(num_groups)[None, :]).astype(jnp.float32)           # (Cout, NG)
    gt = g.T                                                            # (NG, Cout)

    kernel = functools.partial(
        sa_layer_kernel, d_tran=D, nq_real=Nq, nkv_real=Nkv, tq=TQ,
        n_chunks=n_chunks, num_groups=num_groups, compute_dtype=cdt,
        cache_probs=cache_probs, unroll=unroll, approx_recip=approx_recip)

    full = lambda shape: pl.BlockSpec(shape, lambda b: (0,) * len(shape))

    scratch = [
        pltpu.VMEM((D, NQP), jnp.float32),   # q channels-major (f32: diff + residual)
        pltpu.VMEM((2 * D, NKP), cdt),       # fused [k; v] channels-major
        pltpu.VMEM((1, NQP), jnp.float32),   # per-query 1/rowsum
    ]
    if cache_probs:
        scratch.append(pltpu.VMEM((NKP, NQP), cdt))   # cached exp(energy - max)

    est = (D * NQP * 4 + 2 * D * NKP * csize + 8 * NQP * 4
           + (NKP * NQP * csize if cache_probs else 0)
           + 2 * (Cin * NQP + Cin * NKP) * csize + 2 * Cout * NQP * 4
           + 6 * TQ * NKP * 4)
    vmem_limit = min(max(int(est * 1.25) + (4 << 20), 32 << 20), 64 << 20)

    # Note: the only parallel grid axis is the batch; on v7x keep B >= 2 so both
    # TensorCores are busy.
    out = pl.pallas_call(
        kernel,
        out_shape=jax.ShapeDtypeStruct((B, Cout, NQP), jnp.float32),
        grid=(B,),
        in_specs=[
            pl.BlockSpec((None, Cin, NQP), lambda b: (b, 0, 0)),        # x_q  (NCL)
            pl.BlockSpec((None, Cin, NKP), lambda b: (b, 0, 0)),        # x_kv (NCL)
            full((2 * D, Cin)),                                         # fused w_kv
            full((D, 1)),                                               # b_v
            full((Cout, D)),                                            # w_t
            full((Cout, 1)),                                            # b_t
            full((Cout, 1)),                                            # gamma
            full((Cout, 1)),                                            # beta
            full((Cout, num_groups)),                                   # group one-hot
            full((num_groups, Cout)),                                   # its transpose
        ],
        out_specs=pl.BlockSpec((None, Cout, NQP), lambda b: (b, 0, 0)),
        scratch_shapes=scratch,
        compiler_params=pltpu.CompilerParams(
            dimension_semantics=("parallel",),
            vmem_limit_bytes=vmem_limit),
    )(xq_p, xkv_p, w_kv, b_v, w_t, b_t, gamma, beta, g, gt)

    return out[:, :, :Nq]                                               # (B, Cout, Nq)


def reference_forward(x_q, x_kv, params, num_groups=4):
    """Pure-JAX (f32) replica of the PyTorch SA_Layer forward."""
    w_qk, w_v, b_v = params["w_qk"], params["w_v"], params["b_v"]
    w_t, b_t = params["w_t"], params["b_t"]
    gamma, beta = params["gamma"], params["beta"]

    q = jnp.einsum("dc,bcn->bnd", w_qk, x_q)                 # (B, Nq, D)
    k = jnp.einsum("dc,bcn->bdn", w_qk, x_kv)                # (B, D, Nkv)
    v = jnp.einsum("dc,bcn->bdn", w_v, x_kv) + b_v[None, :, None]

    energy = jnp.einsum("bqd,bdk->bqk", q, k)
    attn = jax.nn.softmax(energy, axis=-1)
    attn = attn / (1e-9 + jnp.sum(attn, axis=1, keepdims=True))
    x_r = jnp.einsum("bqk,bdk->bqd", attn, v)                # (B, Nq, D)

    t = jnp.einsum("od,bqd->boq", w_t, q - x_r) + b_t[None, :, None]
    B, Cout, Nq = t.shape
    tg = t.reshape(B, num_groups, Cout // num_groups, Nq)
    mean = jnp.mean(tg, axis=(2, 3), keepdims=True)
    var = jnp.mean((tg - mean) ** 2, axis=(2, 3), keepdims=True)
    tg = (tg - mean) / jnp.sqrt(var + 1e-5)
    t = tg.reshape(B, Cout, Nq) * gamma[None, :, None] + beta[None, :, None]
    t = jnp.maximum(t, 0.0)
    return jnp.transpose(q, (0, 2, 1)) + t                   # (B, Cout, Nq)


def init_params(key, in_channels, d_tran, out_channels):
    ks = jax.random.split(key, 7)
    s_in = 1.0 / jnp.sqrt(in_channels)
    s_d = 1.0 / jnp.sqrt(d_tran)
    return {
        # shared q/k weight (torch: q_conv.weight = k_conv.weight, no bias)
        "w_qk": jax.random.normal(ks[0], (d_tran, in_channels), jnp.float32) * s_in,
        "w_v": jax.random.normal(ks[1], (d_tran, in_channels), jnp.float32) * s_in,
        "b_v": jax.random.normal(ks[2], (d_tran,), jnp.float32) * 0.1,
        "w_t": jax.random.normal(ks[3], (out_channels, d_tran), jnp.float32) * s_d,
        "b_t": jax.random.normal(ks[4], (out_channels,), jnp.float32) * 0.1,
        "gamma": 1.0 + 0.1 * jax.random.normal(ks[5], (out_channels,), jnp.float32),
        "beta": 0.1 * jax.random.normal(ks[6], (out_channels,), jnp.float32),
    }


if __name__ == "__main__":
    # Nq / Nkv deliberately not 128-multiples (exercise padding + masks);
    # q_chunk=128 with Nq=200 -> 2 query chunks (exercise the chunk loops).
    B, C_IN, D_TRAN, C_OUT = 2, 16, 32, 32
    N_Q, N_KV = 200, 96

    key = jax.random.PRNGKey(0)
    kp, kq, kk = jax.random.split(key, 3)
    params = init_params(kp, C_IN, D_TRAN, C_OUT)
    x_q = jax.random.normal(kq, (B, C_IN, N_Q), jnp.float32)
    x_kv = jax.random.normal(kk, (B, C_IN, N_KV), jnp.float32)

    ref = jax.block_until_ready(reference_forward(x_q, x_kv, params))

    # f32 compute path, cached-probabilities branch.
    out32 = jax.block_until_ready(
        sa_layer_forward(x_q, x_kv, params, q_chunk=128,
                         compute_dtype=jnp.float32))
    assert out32.shape == (B, C_OUT, N_Q), out32.shape
    assert jnp.allclose(out32, ref, atol=5e-2, rtol=5e-2), (
        float(jnp.max(jnp.abs(out32 - ref))))

    # f32 compute path, recompute (no-cache) branch.
    out_nc = jax.block_until_ready(
        sa_layer_forward(x_q, x_kv, params, q_chunk=128,
                         compute_dtype=jnp.float32, prob_cache_bytes=0))
    assert jnp.allclose(out_nc, ref, atol=5e-2, rtol=5e-2), (
        float(jnp.max(jnp.abs(out_nc - ref))))

    # bf16 MXU path (default): looser tolerance vs the f32 reference.
    out16 = jax.block_until_ready(
        sa_layer_forward(x_q, x_kv, params, q_chunk=128,
                         compute_dtype=jnp.bfloat16))
    assert out16.shape == (B, C_OUT, N_Q), out16.shape
    assert jnp.allclose(out16, ref, atol=2e-1, rtol=2e-1), (
        float(jnp.max(jnp.abs(out16 - ref))))

    print("KERNEL_OK")
</pallas_src>

<mosaic_0001>
module attributes {stable_mosaic.version = 11 : i64} {
  func.func @sa_layer_kernel(%arg0: i32, %arg1: memref<1x16x256xf32, #tpu.memory_space<vmem>>, %arg2: memref<1x16x128xf32, #tpu.memory_space<vmem>>, %arg3: memref<64x16xf32, #tpu.memory_space<vmem>>, %arg4: memref<32x1xf32, #tpu.memory_space<vmem>>, %arg5: memref<32x32xf32, #tpu.memory_space<vmem>>, %arg6: memref<32x1xf32, #tpu.memory_space<vmem>>, %arg7: memref<32x1xf32, #tpu.memory_space<vmem>>, %arg8: memref<32x1xf32, #tpu.memory_space<vmem>>, %arg9: memref<32x4xf32, #tpu.memory_space<vmem>>, %arg10: memref<4x32xf32, #tpu.memory_space<vmem>>, %arg11: memref<1x32x256xf32, #tpu.memory_space<vmem>>, %arg12: memref<32x256xf32, #tpu.memory_space<vmem>>, %arg13: memref<64x128xf32, #tpu.memory_space<vmem>>, %arg14: memref<1x256xf32, #tpu.memory_space<vmem>>, %arg15: memref<128x256xf32, #tpu.memory_space<vmem>>) attributes {dimension_semantics = [#tpu.dimension_semantics<parallel>], iteration_bounds = array<i64: 2>, scalar_prefetch = 0 : i64, scratch_operands = 4 : i64, tpu.core_type = #tpu.core_type<tc>, window_params = [{transform_indices = @transform_0, window_bounds = array<i64: 1, 16, 256>}, {transform_indices = @transform_1, window_bounds = array<i64: 1, 16, 128>}, {pipeline_mode = #tpu.pipeline_mode<synchronous>, transform_indices = @transform_2, window_bounds = array<i64: 64, 16>}, {pipeline_mode = #tpu.pipeline_mode<synchronous>, transform_indices = @transform_3, window_bounds = array<i64: 32, 1>}, {pipeline_mode = #tpu.pipeline_mode<synchronous>, transform_indices = @transform_4, window_bounds = array<i64: 32, 32>}, {pipeline_mode = #tpu.pipeline_mode<synchronous>, transform_indices = @transform_5, window_bounds = array<i64: 32, 1>}, {pipeline_mode = #tpu.pipeline_mode<synchronous>, transform_indices = @transform_6, window_bounds = array<i64: 32, 1>}, {pipeline_mode = #tpu.pipeline_mode<synchronous>, transform_indices = @transform_7, window_bounds = array<i64: 32, 1>}, {pipeline_mode = #tpu.pipeline_mode<synchronous>, transform_indices = @transform_8, window_bounds = array<i64: 32, 4>}, {pipeline_mode = #tpu.pipeline_mode<synchronous>, transform_indices = @transform_9, window_bounds = array<i64: 4, 32>}, {transform_indices = @transform_10, window_bounds = array<i64: 1, 32, 256>}]} {
    %c0 = arith.constant 0 : index
    %c0_0 = arith.constant 0 : index
    %0 = vector.load %arg3[%c0, %c0_0] : memref<64x16xf32, #tpu.memory_space<vmem>>, vector<32x16xf32>
    %c0_1 = arith.constant 0 : index
    %c0_2 = arith.constant 0 : index
    %c0_3 = arith.constant 0 : index
    %1 = vector.load %arg1[%c0_1, %c0_2, %c0_3] : memref<1x16x256xf32, #tpu.memory_space<vmem>>, vector<1x16x256xf32>
    %2 = vector.shape_cast %1 : vector<1x16x256xf32> to vector<16x256xf32>
    %cst = arith.constant dense<0.000000e+00> : vector<32x256xf32>
    %3 = tpu.matmul %0, %2, %cst {dimension_numbers = #tpu.dot_dimension_numbers<[1], [0], [0], [1], [0, 0, 1, 1], [], []>} : vector<32x16xf32>, vector<16x256xf32>, vector<32x256xf32> -> vector<32x256xf32>
    %c0_4 = arith.constant 0 : index
    %c0_5 = arith.constant 0 : index
    %4 = vector.load %arg12[%c0_4, %c0_5] : memref<32x256xf32, #tpu.memory_space<vmem>>, vector<32x256xf32>
    tpu.vector_store %arg12[%c0_4, %c0_5], %3 {strides = array<i32>} : memref<32x256xf32, #tpu.memory_space<vmem>>, vector<32x256xf32>,
    %c0_6 = arith.constant 0 : index
    %c0_7 = arith.constant 0 : index
    %5 = vector.load %arg3[%c0_6, %c0_7] : memref<64x16xf32, #tpu.memory_space<vmem>>, vector<64x16xf32>
    %c0_8 = arith.constant 0 : index
    %c0_9 = arith.constant 0 : index
    %c0_10 = arith.constant 0 : index
    %6 = vector.load %arg2[%c0_8, %c0_9, %c0_10] : memref<1x16x128xf32, #tpu.memory_space<vmem>>, vector<1x16x128xf32>
    %7 = vector.shape_cast %6 : vector<1x16x128xf32> to vector<16x128xf32>
    %cst_11 = arith.constant dense<0.000000e+00> : vector<64x128xf32>
    %8 = tpu.matmul %5, %7, %cst_11 {dimension_numbers = #tpu.dot_dimension_numbers<[1], [0], [0], [1], [0, 0, 1, 1], [], []>} : vector<64x16xf32>, vector<16x128xf32>, vector<64x128xf32> -> vector<64x128xf32>
    %c0_12 = arith.constant 0 : index
    %c0_13 = arith.constant 0 : index
    %9 = vector.load %arg13[%c0_12, %c0_13] : memref<64x128xf32, #tpu.memory_space<vmem>>, vector<64x128xf32>
    tpu.vector_store %arg13[%c0_12, %c0_13], %8 {strides = array<i32>} : memref<64x128xf32, #tpu.memory_space<vmem>>, vector<64x128xf32>,
    %10 = tpu.iota {dimensions = array<i32: 0>} : vector<128x1xi32>
    %c96_i32 = arith.constant 96 : i32
    %11 = vector.broadcast %c96_i32 : i32 to vector<128x1xi32>
    %12 = arith.cmpi slt, %10, %11 : vector<128x1xi32>
    %cst_14 = arith.constant 0.000000e+00 : f32
    %cst_15 = arith.constant -1.000000e+30 : f32
    %13 = vector.broadcast %cst_14 : f32 to vector<128x1xf32>
    %14 = vector.broadcast %cst_15 : f32 to vector<128x1xf32>
    %15 = arith.select %12, %13, %14 : vector<128x1xi1>, vector<128x1xf32>
    %cst_16 = arith.constant 0.000000e+00 : f32
    %16 = vector.broadcast %cst_16 : f32 to vector<1x128xf32>
    %c0_i32 = arith.constant 0 : i32
    %c128_i32 = arith.constant 128 : i32
    %17 = arith.muli %c0_i32, %c128_i32 : i32
    %18 = tpu.assume_multiple %17, 128 : i32
    %c0_17 = arith.constant 0 : index
    %19 = arith.index_cast %18 : i32 to index
    %20 = vector.load %arg12[%c0_17, %19] : memref<32x256xf32, #tpu.memory_space<vmem>>, vector<32x128xf32>
    %c0_18 = arith.constant 0 : index
    %c0_19 = arith.constant 0 : index
    %21 = vector.load %arg13[%c0_18, %c0_19] : memref<64x128xf32, #tpu.memory_space<vmem>>, vector<32x128xf32>
    %cst_20 = arith.constant dense<0.000000e+00> : vector<128x128xf32>
    %22 = tpu.matmul %21, %20, %cst_20 {dimension_numbers = #tpu.dot_dimension_numbers<[0], [0], [1], [1], [0, 1, 1, 1], [], []>} : vector<32x128xf32>, vector<32x128xf32>, vector<128x128xf32> -> vector<128x128xf32>
    %23 = vector.broadcast %15 : vector<128x1xf32> to vector<128x128xf32>
    %24 = arith.addf %22, %23 : vector<128x128xf32>
    %cst_21 = arith.constant dense<0xFF800000> : vector<128xf32>
    %25 = vector.multi_reduction <maximumf>, %24, %cst_21 [0] : vector<128x128xf32> to vector<128xf32>
    %26 = vector.shape_cast %25 : vector<128xf32> to vector<1x128xf32>
    %27 = vector.broadcast %26 : vector<1x128xf32> to vector<128x128xf32>
    %28 = arith.subf %24, %27 : vector<128x128xf32>
    %29 = math.exp %28 : vector<128x128xf32>
    %cst_22 = arith.constant dense<0.000000e+00> : vector<128xf32>
    %30 = vector.multi_reduction <add>, %29, %cst_22 [0] : vector<128x128xf32> to vector<128xf32>
    %31 = vector.shape_cast %30 : vector<128xf32> to vector<1x128xf32>
    %32 = tpu.reciprocal %31 : vector<1x128xf32> -> vector<1x128xf32>
    %c0_23 = arith.constant 0 : index
    %33 = arith.index_cast %18 : i32 to index
    %34 = vector.load %arg14[%c0_23, %33] : memref<1x256xf32, #tpu.memory_space<vmem>>, vector<1x128xf32>
    tpu.vector_store %arg14[%c0_23, %33], %32 {strides = array<i32>} : memref<1x256xf32, #tpu.memory_space<vmem>>, vector<1x128xf32>,
    %c0_24 = arith.constant 0 : index
    %35 = arith.index_cast %18 : i32 to index
    %36 = vector.load %arg15[%c0_24, %35] : memref<128x256xf32, #tpu.memory_space<vmem>>, vector<128x128xf32>
    tpu.vector_store %arg15[%c0_24, %35], %29 {strides = array<i32>} : memref<128x256xf32, #tpu.memory_space<vmem>>, vector<128x128xf32>,
    %37 = tpu.iota {dimensions = array<i32: 1>} : vector<1x128xi32>
    %38 = vector.broadcast %18 : i32 to vector<1x128xi32>
    %39 = arith.addi %38, %37 : vector<1x128xi32>
    %c200_i32 = arith.constant 200 : i32
    %40 = vector.broadcast %c200_i32 : i32 to vector<1x128xi32>
    %41 = arith.cmpi slt, %39, %40 : vector<1x128xi32>
    %cst_25 = arith.constant 0.000000e+00 : f32
    %42 = vector.broadcast %cst_25 : f32 to vector<1x128xf32>
    %43 = arith.select %41, %32, %42 : vector<1x128xi1>, vector<1x128xf32>
    %cst_26 = arith.constant dense<0.000000e+00> : vector<1x128xf32>
    %44 = tpu.matmul %43, %29, %cst_26 {dimension_numbers = #tpu.dot_dimension_numbers<[1], [1], [0], [0], [0, 0, 1, 0], [], []>} : vector<1x128xf32>, vector<128x128xf32>, vector<1x128xf32> -> vector<1x128xf32>
    %45 = arith.addf %16, %44 : vector<1x128xf32>
    %c1_i32 = arith.constant 1 : i32
    %c128_i32_27 = arith.constant 128 : i32
    %46 = arith.muli %c1_i32, %c128_i32_27 : i32
    %47 = tpu.assume_multiple %46, 128 : i32
    %c0_28 = arith.constant 0 : index
    %48 = arith.index_cast %47 : i32 to index
    %49 = vector.load %arg12[%c0_28, %48] : memref<32x256xf32, #tpu.memory_space<vmem>>, vector<32x128xf32>
    %c0_29 = arith.constant 0 : index
    %c0_30 = arith.constant 0 : index
    %50 = vector.load %arg13[%c0_29, %c0_30] : memref<64x128xf32, #tpu.memory_space<vmem>>, vector<32x128xf32>
    %cst_31 = arith.constant dense<0.000000e+00> : vector<128x128xf32>
    %51 = tpu.matmul %50, %49, %cst_31 {dimension_numbers = #tpu.dot_dimension_numbers<[0], [0], [1], [1], [0, 1, 1, 1], [], []>} : vector<32x128xf32>, vector<32x128xf32>, vector<128x128xf32> -> vector<128x128xf32>
    %52 = vector.broadcast %15 : vector<128x1xf32> to vector<128x128xf32>
    %53 = arith.addf %51, %52 : vector<128x128xf32>
    %cst_32 = arith.constant dense<0xFF800000> : vector<128xf32>
    %54 = vector.multi_reduction <maximumf>, %53, %cst_32 [0] : vector<128x128xf32> to vector<128xf32>
    %55 = vector.shape_cast %54 : vector<128xf32> to vector<1x128xf32>
    %56 = vector.broadcast %55 : vector<1x128xf32> to vector<128x128xf32>
    %57 = arith.subf %53, %56 : vector<128x128xf32>
    %58 = math.exp %57 : vector<128x128xf32>
    %cst_33 = arith.constant dense<0.000000e+00> : vector<128xf32>
    %59 = vector.multi_reduction <add>, %58, %cst_33 [0] : vector<128x128xf32> to vector<128xf32>
    %60 = vector.shape_cast %59 : vector<128xf32> to vector<1x128xf32>
    %61 = tpu.reciprocal %60 : vector<1x128xf32> -> vector<1x128xf32>
    %c0_34 = arith.constant 0 : index
    %62 = arith.index_cast %47 : i32 to index
    %63 = vector.load %arg14[%c0_34, %62] : memref<1x256xf32, #tpu.memory_space<vmem>>, vector<1x128xf32>
    tpu.vector_store %arg14[%c0_34, %62], %61 {strides = array<i32>} : memref<1x256xf32, #tpu.memory_space<vmem>>, vector<1x128xf32>,
    %c0_35 = arith.constant 0 : index
    %64 = arith.index_cast %47 : i32 to index
    %65 = vector.load %arg15[%c0_35, %64] : memref<128x256xf32, #tpu.memory_space<vmem>>, vector<128x128xf32>
    tpu.vector_store %arg15[%c0_35, %64], %58 {strides = array<i32>} : memref<128x256xf32, #tpu.memory_space<vmem>>, vector<128x128xf32>,
    %66 = tpu.iota {dimensions = array<i32: 1>} : vector<1x128xi32>
    %67 = vector.broadcast %47 : i32 to vector<1x128xi32>
    %68 = arith.addi %67, %66 : vector<1x128xi32>
    %c200_i32_36 = arith.constant 200 : i32
    %69 = vector.broadcast %c200_i32_36 : i32 to vector<1x128xi32>
    %70 = arith.cmpi slt, %68, %69 : vector<1x128xi32>
    %cst_37 = arith.constant 0.000000e+00 : f32
    %71 = vector.broadcast %cst_37 : f32 to vector<1x128xf32>
    %72 = arith.select %70, %61, %71 : vector<1x128xi1>, vector<1x128xf32>
    %cst_38 = arith.constant dense<0.000000e+00> : vector<1x128xf32>
    %73 = tpu.matmul %72, %58, %cst_38 {dimension_numbers = #tpu.dot_dimension_numbers<[1], [1], [0], [0], [0, 0, 1, 0], [], []>} : vector<1x128xf32>, vector<128x128xf32>, vector<1x128xf32> -> vector<1x128xf32>
    %74 = arith.addf %45, %73 : vector<1x128xf32>
    %c2_i32 = arith.constant 2 : i32
    %cst_39 = arith.constant 9.99999971E-10 : f32
    %75 = vector.broadcast %cst_39 : f32 to vector<1x128xf32>
    %76 = arith.addf %74, %75 : vector<1x128xf32>
    %77 = tpu.reciprocal %76 : vector<1x128xf32> -> vector<1x128xf32>
    %c32 = arith.constant 32 : index
    %c0_40 = arith.constant 0 : index
    %78 = vector.load %arg13[%c32, %c0_40] : memref<64x128xf32, #tpu.memory_space<vmem>>, vector<32x128xf32>
    %c0_41 = arith.constant 0 : index
    %c0_42 = arith.constant 0 : index
    %79 = vector.load %arg4[%c0_41, %c0_42] : memref<32x1xf32, #tpu.memory_space<vmem>>, vector<32x1xf32>
    %80 = vector.broadcast %79 : vector<32x1xf32> to vector<32x128xf32>
    %81 = arith.addf %78, %80 : vector<32x128xf32>
    %82 = vector.broadcast %77 : vector<1x128xf32> to vector<32x128xf32>
    %83 = arith.mulf %81, %82 : vector<32x128xf32>
    %c32_43 = arith.constant 32 : index
    %c0_44 = arith.constant 0 : index
    %84 = vector.load %arg13[%c32_43, %c0_44] : memref<64x128xf32, #tpu.memory_space<vmem>>, vector<32x128xf32>
    tpu.vector_store %arg13[%c32_43, %c0_44], %83 {strides = array<i32>} : memref<64x128xf32, #tpu.memory_space<vmem>>, vector<32x128xf32>,
    %cst_45 = arith.constant 0.000000e+00 : f32
    %85 = vector.broadcast %cst_45 : f32 to vector<32x1xf32>
    %cst_46 = arith.constant 0.000000e+00 : f32
    %86 = vector.broadcast %cst_46 : f32 to vector<32x1xf32>
    %c0_i32_47 = arith.constant 0 : i32
    %c128_i32_48 = arith.constant 128 : i32
    %87 = arith.muli %c0_i32_47, %c128_i32_48 : i32
    %88 = tpu.assume_multiple %87, 128 : i32
    %c0_49 = arith.constant 0 : index
    %89 = arith.index_cast %88 : i32 to index
    %90 = vector.load %arg15[%c0_49, %89] : memref<128x256xf32, #tpu.memory_space<vmem>>, vector<128x128xf32>
    %c32_50 = arith.constant 32 : index
    %c0_51 = arith.constant 0 : index
    %91 = vector.load %arg13[%c32_50, %c0_51] : memref<64x128xf32, #tpu.memory_space<vmem>>, vector<32x128xf32>
    %cst_52 = arith.constant dense<0.000000e+00> : vector<32x128xf32>
    %92 = tpu.matmul %91, %90, %cst_52 {dimension_numbers = #tpu.dot_dimension_numbers<[1], [0], [0], [1], [0, 0, 1, 1], [], []>} : vector<32x128xf32>, vector<128x128xf32>, vector<32x128xf32> -> vector<32x128xf32>
    %c0_53 = arith.constant 0 : index
    %93 = arith.index_cast %88 : i32 to index
    %94 = vector.load %arg14[%c0_53, %93] : memref<1x256xf32, #tpu.memory_space<vmem>>, vector<1x128xf32>
    %95 = vector.broadcast %94 : vector<1x128xf32> to vector<32x128xf32>
    %96 = arith.mulf %92, %95 : vector<32x128xf32>
    %c0_54 = arith.constant 0 : index
    %97 = arith.index_cast %88 : i32 to index
    %98 = vector.load %arg12[%c0_54, %97] : memref<32x256xf32, #tpu.memory_space<vmem>>, vector<32x128xf32>
    %99 = arith.subf %98, %96 : vector<32x128xf32>
    %c0_55 = arith.constant 0 : index
    %c0_56 = arith.constant 0 : index
    %100 = vector.load %arg5[%c0_55, %c0_56] : memref<32x32xf32, #tpu.memory_space<vmem>>, vector<32x32xf32>
    %cst_57 = arith.constant dense<0.000000e+00> : vector<32x128xf32>
    %101 = tpu.matmul %100, %99, %cst_57 {dimension_numbers = #tpu.dot_dimension_numbers<[1], [0], [0], [1], [0, 0, 1, 1], [], []>} : vector<32x32xf32>, vector<32x128xf32>, vector<32x128xf32> -> vector<32x128xf32>
    %c0_58 = arith.constant 0 : index
    %c0_59 = arith.constant 0 : index
    %102 = vector.load %arg6[%c0_58, %c0_59] : memref<32x1xf32, #tpu.memory_space<vmem>>, vector<32x1xf32>
    %103 = vector.broadcast %102 : vector<32x1xf32> to vector<32x128xf32>
    %104 = arith.addf %101, %103 : vector<32x128xf32>
    %c0_60 = arith.constant 0 : index
    %c0_61 = arith.constant 0 : index
    %105 = arith.index_cast %88 : i32 to index
    %106 = vector.load %arg11[%c0_60, %c0_61, %105] : memref<1x32x256xf32, #tpu.memory_space<vmem>>, vector<1x32x128xf32>
    %107 = vector.shape_cast %106 : vector<1x32x128xf32> to vector<32x128xf32>
    %108 = vector.shape_cast %104 : vector<32x128xf32> to vector<1x32x128xf32>
    tpu.vector_store %arg11[%c0_60, %c0_61, %105], %108 {strides = array<i32>} : memref<1x32x256xf32, #tpu.memory_space<vmem>>, vector<1x32x128xf32>,
    %109 = tpu.iota {dimensions = array<i32: 0>} : vector<128x1xi32>
    %110 = vector.broadcast %88 : i32 to vector<128x1xi32>
    %111 = arith.addi %110, %109 : vector<128x1xi32>
    %c200_i32_62 = arith.constant 200 : i32
    %112 = vector.broadcast %c200_i32_62 : i32 to vector<128x1xi32>
    %113 = arith.cmpi slt, %111, %112 : vector<128x1xi32>
    %cst_63 = arith.constant 1.000000e+00 : f32
    %cst_64 = arith.constant 0.000000e+00 : f32
    %114 = vector.broadcast %cst_63 : f32 to vector<128x1xf32>
    %115 = vector.broadcast %cst_64 : f32 to vector<128x1xf32>
    %116 = arith.select %113, %114, %115 : vector<128x1xi1>, vector<128x1xf32>
    %cst_65 = arith.constant dense<0.000000e+00> : vector<32x1xf32>
    %117 = tpu.matmul %104, %116, %cst_65 {dimension_numbers = #tpu.dot_dimension_numbers<[1], [0], [0], [1], [0, 0, 1, 1], [], []>} : vector<32x128xf32>, vector<128x1xf32>, vector<32x1xf32> -> vector<32x1xf32>
    %118 = arith.addf %85, %117 : vector<32x1xf32>
    %119 = arith.mulf %104, %104 : vector<32x128xf32>
    %cst_66 = arith.constant dense<0.000000e+00> : vector<32x1xf32>
    %120 = tpu.matmul %119, %116, %cst_66 {dimension_numbers = #tpu.dot_dimension_numbers<[1], [0], [0], [1], [0, 0, 1, 1], [], []>} : vector<32x128xf32>, vector<128x1xf32>, vector<32x1xf32> -> vector<32x1xf32>
    %121 = arith.addf %86, %120 : vector<32x1xf32>
    %c1_i32_67 = arith.constant 1 : i32
    %c128_i32_68 = arith.constant 128 : i32
    %122 = arith.muli %c1_i32_67, %c128_i32_68 : i32
    %123 = tpu.assume_multiple %122, 128 : i32
    %c0_69 = arith.constant 0 : index
    %124 = arith.index_cast %123 : i32 to index
    %125 = vector.load %arg15[%c0_69, %124] : memref<128x256xf32, #tpu.memory_space<vmem>>, vector<128x128xf32>
    %c32_70 = arith.constant 32 : index
    %c0_71 = arith.constant 0 : index
    %126 = vector.load %arg13[%c32_70, %c0_71] : memref<64x128xf32, #tpu.memory_space<vmem>>, vector<32x128xf32>
    %cst_72 = arith.constant dense<0.000000e+00> : vector<32x128xf32>
    %127 = tpu.matmul %126, %125, %cst_72 {dimension_numbers = #tpu.dot_dimension_numbers<[1], [0], [0], [1], [0, 0, 1, 1], [], []>} : vector<32x128xf32>, vector<128x128xf32>, vector<32x128xf32> -> vector<32x128xf32>
    %c0_73 = arith.constant 0 : index
    %128 = arith.index_cast %123 : i32 to index
    %129 = vector.load %arg14[%c0_73, %128] : memref<1x256xf32, #tpu.memory_space<vmem>>, vector<1x128xf32>
    %130 = vector.broadcast %129 : vector<1x128xf32> to vector<32x128xf32>
    %131 = arith.mulf %127, %130 : vector<32x128xf32>
    %c0_74 = arith.constant 0 : index
    %132 = arith.index_cast %123 : i32 to index
    %133 = vector.load %arg12[%c0_74, %132] : memref<32x256xf32, #tpu.memory_space<vmem>>, vector<32x128xf32>
    %134 = arith.subf %133, %131 : vector<32x128xf32>
    %c0_75 = arith.constant 0 : index
    %c0_76 = arith.constant 0 : index
    %135 = vector.load %arg5[%c0_75, %c0_76] : memref<32x32xf32, #tpu.memory_space<vmem>>, vector<32x32xf32>
    %cst_77 = arith.constant dense<0.000000e+00> : vector<32x128xf32>
    %136 = tpu.matmul %135, %134, %cst_77 {dimension_numbers = #tpu.dot_dimension_numbers<[1], [0], [0], [1], [0, 0, 1, 1], [], []>} : vector<32x32xf32>, vector<32x128xf32>, vector<32x128xf32> -> vector<32x128xf32>
    %c0_78 = arith.constant 0 : index
    %c0_79 = arith.constant 0 : index
    %137 = vector.load %arg6[%c0_78, %c0_79] : memref<32x1xf32, #tpu.memory_space<vmem>>, vector<32x1xf32>
    %138 = vector.broadcast %137 : vector<32x1xf32> to vector<32x128xf32>
    %139 = arith.addf %136, %138 : vector<32x128xf32>
    %c0_80 = arith.constant 0 : index
    %c0_81 = arith.constant 0 : index
    %140 = arith.index_cast %123 : i32 to index
    %141 = vector.load %arg11[%c0_80, %c0_81, %140] : memref<1x32x256xf32, #tpu.memory_space<vmem>>, vector<1x32x128xf32>
    %142 = vector.shape_cast %141 : vector<1x32x128xf32> to vector<32x128xf32>
    %143 = vector.shape_cast %139 : vector<32x128xf32> to vector<1x32x128xf32>
    tpu.vector_store %arg11[%c0_80, %c0_81, %140], %143 {strides = array<i32>} : memref<1x32x256xf32, #tpu.memory_space<vmem>>, vector<1x32x128xf32>,
    %144 = tpu.iota {dimensions = array<i32: 0>} : vector<128x1xi32>
    %145 = vector.broadcast %123 : i32 to vector<128x1xi32>
    %146 = arith.addi %145, %144 : vector<128x1xi32>
    %c200_i32_82 = arith.constant 200 : i32
    %147 = vector.broadcast %c200_i32_82 : i32 to vector<128x1xi32>
    %148 = arith.cmpi slt, %146, %147 : vector<128x1xi32>
    %cst_83 = arith.constant 1.000000e+00 : f32
    %cst_84 = arith.constant 0.000000e+00 : f32
    %149 = vector.broadcast %cst_83 : f32 to vector<128x1xf32>
    %150 = vector.broadcast %cst_84 : f32 to vector<128x1xf32>
    %151 = arith.select %148, %149, %150 : vector<128x1xi1>, vector<128x1xf32>
    %cst_85 = arith.constant dense<0.000000e+00> : vector<32x1xf32>
    %152 = tpu.matmul %139, %151, %cst_85 {dimension_numbers = #tpu.dot_dimension_numbers<[1], [0], [0], [1], [0, 0, 1, 1], [], []>} : vector<32x128xf32>, vector<128x1xf32>, vector<32x1xf32> -> vector<32x1xf32>
    %153 = arith.addf %118, %152 : vector<32x1xf32>
    %154 = arith.mulf %139, %139 : vector<32x128xf32>
    %cst_86 = arith.constant dense<0.000000e+00> : vector<32x1xf32>
    %155 = tpu.matmul %154, %151, %cst_86 {dimension_numbers = #tpu.dot_dimension_numbers<[1], [0], [0], [1], [0, 0, 1, 1], [], []>} : vector<32x128xf32>, vector<128x1xf32>, vector<32x1xf32> -> vector<32x1xf32>
    %156 = arith.addf %121, %155 : vector<32x1xf32>
    %c2_i32_87 = arith.constant 2 : i32
    %c0_88 = arith.constant 0 : index
    %c0_89 = arith.constant 0 : index
    %157 = vector.load %arg10[%c0_88, %c0_89] : memref<4x32xf32, #tpu.memory_space<vmem>>, vector<4x32xf32>
    %cst_90 = arith.constant dense<0.000000e+00> : vector<4x1xf32>
    %158 = tpu.matmul %157, %153, %cst_90 {dimension_numbers = #tpu.dot_dimension_numbers<[1], [0], [0], [1], [0, 0, 1, 1], [], []>} : vector<4x32xf32>, vector<32x1xf32>, vector<4x1xf32> -> vector<4x1xf32>
    %cst_91 = arith.constant 6.250000e-04 : f32
    %159 = vector.broadcast %cst_91 : f32 to vector<4x1xf32>
    %160 = arith.mulf %158, %159 : vector<4x1xf32>
    %c0_92 = arith.constant 0 : index
    %c0_93 = arith.constant 0 : index
    %161 = vector.load %arg10[%c0_92, %c0_93] : memref<4x32xf32, #tpu.memory_space<vmem>>, vector<4x32xf32>
    %cst_94 = arith.constant dense<0.000000e+00> : vector<4x1xf32>
    %162 = tpu.matmul %161, %156, %cst_94 {dimension_numbers = #tpu.dot_dimension_numbers<[1], [0], [0], [1], [0, 0, 1, 1], [], []>} : vector<4x32xf32>, vector<32x1xf32>, vector<4x1xf32> -> vector<4x1xf32>
    %cst_95 = arith.constant 6.250000e-04 : f32
    %163 = vector.broadcast %cst_95 : f32 to vector<4x1xf32>
    %164 = arith.mulf %162, %163 : vector<4x1xf32>
    %165 = arith.mulf %160, %160 : vector<4x1xf32>
    %166 = arith.subf %164, %165 : vector<4x1xf32>
    %cst_96 = arith.constant 9.99999974E-6 : f32
    %167 = vector.broadcast %cst_96 : f32 to vector<4x1xf32>
    %168 = arith.addf %166, %167 : vector<4x1xf32>
    %169 = math.rsqrt %168 : vector<4x1xf32>
    %c0_97 = arith.constant 0 : index
    %c0_98 = arith.constant 0 : index
    %170 = vector.load %arg9[%c0_97, %c0_98] : memref<32x4xf32, #tpu.memory_space<vmem>>, vector<32x4xf32>
    %cst_99 = arith.constant dense<0.000000e+00> : vector<32x1xf32>
    %171 = tpu.matmul %170, %160, %cst_99 {dimension_numbers = #tpu.dot_dimension_numbers<[1], [0], [0], [1], [0, 0, 1, 1], [], []>} : vector<32x4xf32>, vector<4x1xf32>, vector<32x1xf32> -> vector<32x1xf32>
    %c0_100 = arith.constant 0 : index
    %c0_101 = arith.constant 0 : index
    %172 = vector.load %arg9[%c0_100, %c0_101] : memref<32x4xf32, #tpu.memory_space<vmem>>, vector<32x4xf32>
    %cst_102 = arith.constant dense<0.000000e+00> : vector<32x1xf32>
    %173 = tpu.matmul %172, %169, %cst_102 {dimension_numbers = #tpu.dot_dimension_numbers<[1], [0], [0], [1], [0, 0, 1, 1], [], []>} : vector<32x4xf32>, vector<4x1xf32>, vector<32x1xf32> -> vector<32x1xf32>
    %c0_103 = arith.constant 0 : index
    %c0_104 = arith.constant 0 : index
    %174 = vector.load %arg7[%c0_103, %c0_104] : memref<32x1xf32, #tpu.memory_space<vmem>>, vector<32x1xf32>
    %175 = arith.mulf %173, %174 : vector<32x1xf32>
    %c0_105 = arith.constant 0 : index
    %c0_106 = arith.constant 0 : index
    %176 = vector.load %arg8[%c0_105, %c0_106] : memref<32x1xf32, #tpu.memory_space<vmem>>, vector<32x1xf32>
    %177 = arith.mulf %171, %175 : vector<32x1xf32>
    %178 = arith.subf %176, %177 : vector<32x1xf32>
    %c0_i32_107 = arith.constant 0 : i32
    %c1_i32_108 = arith.constant 1 : i32
    %179 = arith.muli %c0_i32_107, %c1_i32_108 : i32
    %c0_i32_109 = arith.constant 0 : i32
    %180 = arith.addi %c0_i32_109, %179 : i32
    %c128_i32_110 = arith.constant 128 : i32
    %181 = arith.muli %180, %c128_i32_110 : i32
    %182 = tpu.assume_multiple %181, 128 : i32
    %c0_111 = arith.constant 0 : index
    %c0_112 = arith.constant 0 : index
    %183 = arith.index_cast %182 : i32 to index
    %184 = vector.load %arg11[%c0_111, %c0_112, %183] : memref<1x32x256xf32, #tpu.memory_space<vmem>>, vector<1x32x128xf32>
    %185 = vector.shape_cast %184 : vector<1x32x128xf32> to vector<32x128xf32>
    %186 = vector.broadcast %175 : vector<32x1xf32> to vector<32x128xf32>
    %187 = arith.mulf %185, %186 : vector<32x128xf32>
    %188 = vector.broadcast %178 : vector<32x1xf32> to vector<32x128xf32>
    %189 = arith.addf %187, %188 : vector<32x128xf32>
    %cst_113 = arith.constant 0.000000e+00 : f32
    %190 = vector.broadcast %cst_113 : f32 to vector<32x128xf32>
    %191 = arith.maximumf %189, %190 : vector<32x128xf32>
    %c0_114 = arith.constant 0 : index
    %192 = arith.index_cast %182 : i32 to index
    %193 = vector.load %arg12[%c0_114, %192] : memref<32x256xf32, #tpu.memory_space<vmem>>, vector<32x128xf32>
    %194 = arith.addf %193, %191 : vector<32x128xf32>
    %c0_115 = arith.constant 0 : index
    %c0_116 = arith.constant 0 : index
    %195 = arith.index_cast %182 : i32 to index
    %196 = vector.load %arg11[%c0_115, %c0_116, %195] : memref<1x32x256xf32, #tpu.memory_space<vmem>>, vector<1x32x128xf32>
    %197 = vector.shape_cast %196 : vector<1x32x128xf32> to vector<32x128xf32>
    %198 = vector.shape_cast %194 : vector<32x128xf32> to vector<1x32x128xf32>
    tpu.vector_store %arg11[%c0_115, %c0_116, %195], %198 {strides = array<i32>} : memref<1x32x256xf32, #tpu.memory_space<vmem>>, vector<1x32x128xf32>,
    %c1_i32_117 = arith.constant 1 : i32
    %c1_i32_118 = arith.constant 1 : i32
    %199 = arith.muli %c1_i32_117, %c1_i32_118 : i32
    %c0_i32_119 = arith.constant 0 : i32
    %200 = arith.addi %c0_i32_119, %199 : i32
    %c128_i32_120 = arith.constant 128 : i32
    %201 = arith.muli %200, %c128_i32_120 : i32
    %202 = tpu.assume_multiple %201, 128 : i32
    %c0_121 = arith.constant 0 : index
    %c0_122 = arith.constant 0 : index
    %203 = arith.index_cast %202 : i32 to index
    %204 = vector.load %arg11[%c0_121, %c0_122, %203] : memref<1x32x256xf32, #tpu.memory_space<vmem>>, vector<1x32x128xf32>
    %205 = vector.shape_cast %204 : vector<1x32x128xf32> to vector<32x128xf32>
    %206 = vector.broadcast %175 : vector<32x1xf32> to vector<32x128xf32>
    %207 = arith.mulf %205, %206 : vector<32x128xf32>
    %208 = vector.broadcast %178 : vector<32x1xf32> to vector<32x128xf32>
    %209 = arith.addf %207, %208 : vector<32x128xf32>
    %cst_123 = arith.constant 0.000000e+00 : f32
    %210 = vector.broadcast %cst_123 : f32 to vector<32x128xf32>
    %211 = arith.maximumf %209, %210 : vector<32x128xf32>
    %c0_124 = arith.constant 0 : index
    %212 = arith.index_cast %202 : i32 to index
    %213 = vector.load %arg12[%c0_124, %212] : memref<32x256xf32, #tpu.memory_space<vmem>>, vector<32x128xf32>
    %214 = arith.addf %213, %211 : vector<32x128xf32>
    %c0_125 = arith.constant 0 : index
    %c0_126 = arith.constant 0 : index
    %215 = arith.index_cast %202 : i32 to index
    %216 = vector.load %arg11[%c0_125, %c0_126, %215] : memref<1x32x256xf32, #tpu.memory_space<vmem>>, vector<1x32x128xf32>
    %217 = vector.shape_cast %216 : vector<1x32x128xf32> to vector<32x128xf32>
    %218 = vector.shape_cast %214 : vector<32x128xf32> to vector<1x32x128xf32>
    tpu.vector_store %arg11[%c0_125, %c0_126, %215], %218 {strides = array<i32>} : memref<1x32x256xf32, #tpu.memory_space<vmem>>, vector<1x32x128xf32>,
    %c2_i32_127 = arith.constant 2 : i32
    return
  }
  func.func @transform_0(%arg0: i32) -> (i32, i32, i32) {
    %c0_i32 = arith.constant 0 : i32
    %c0_i32_0 = arith.constant 0 : i32
    %c0_i32_1 = arith.constant 0 : i32
    return %arg0, %c0_i32, %c0_i32_0 : i32, i32, i32
  }
  func.func @transform_1(%arg0: i32) -> (i32, i32, i32) {
    %c0_i32 = arith.constant 0 : i32
    %c0_i32_0 = arith.constant 0 : i32
    %c0_i32_1 = arith.constant 0 : i32
    return %arg0, %c0_i32, %c0_i32_0 : i32, i32, i32
  }
  func.func @transform_2(%arg0: i32) -> (i32, i32) {
    %c0_i32 = arith.constant 0 : i32
    %c0_i32_0 = arith.constant 0 : i32
    %c0_i32_1 = arith.constant 0 : i32
    return %c0_i32, %c0_i32_0 : i32, i32
  }
  func.func @transform_3(%arg0: i32) -> (i32, i32) {
    %c0_i32 = arith.constant 0 : i32
    %c0_i32_0 = arith.constant 0 : i32
    %c0_i32_1 = arith.constant 0 : i32
    return %c0_i32, %c0_i32_0 : i32, i32
  }
  func.func @transform_4(%arg0: i32) -> (i32, i32) {
    %c0_i32 = arith.constant 0 : i32
    %c0_i32_0 = arith.constant 0 : i32
    %c0_i32_1 = arith.constant 0 : i32
    return %c0_i32, %c0_i32_0 : i32, i32
  }
  func.func @transform_5(%arg0: i32) -> (i32, i32) {
    %c0_i32 = arith.constant 0 : i32
    %c0_i32_0 = arith.constant 0 : i32
    %c0_i32_1 = arith.constant 0 : i32
    return %c0_i32, %c0_i32_0 : i32, i32
  }
  func.func @transform_6(%arg0: i32) -> (i32, i32) {
    %c0_i32 = arith.constant 0 : i32
    %c0_i32_0 = arith.constant 0 : i32
    %c0_i32_1 = arith.constant 0 : i32
    return %c0_i32, %c0_i32_0 : i32, i32
  }
  func.func @transform_7(%arg0: i32) -> (i32, i32) {
    %c0_i32 = arith.constant 0 : i32
    %c0_i32_0 = arith.constant 0 : i32
    %c0_i32_1 = arith.constant 0 : i32
    return %c0_i32, %c0_i32_0 : i32, i32
  }
  func.func @transform_8(%arg0: i32) -> (i32, i32) {
    %c0_i32 = arith.constant 0 : i32
    %c0_i32_0 = arith.constant 0 : i32
    %c0_i32_1 = arith.constant 0 : i32
    return %c0_i32, %c0_i32_0 : i32, i32
  }
  func.func @transform_9(%arg0: i32) -> (i32, i32) {
    %c0_i32 = arith.constant 0 : i32
    %c0_i32_0 = arith.constant 0 : i32
    %c0_i32_1 = arith.constant 0 : i32
    return %c0_i32, %c0_i32_0 : i32, i32
  }
  func.func @transform_10(%arg0: i32) -> (i32, i32, i32) {
    %c0_i32 = arith.constant 0 : i32
    %c0_i32_0 = arith.constant 0 : i32
    %c0_i32_1 = arith.constant 0 : i32
    return %arg0, %c0_i32, %c0_i32_0 : i32, i32, i32
  }
}

</mosaic_0001>

<bundles_post_ra>
// kernel: tpu_custom_call.1
= control target key start
LH: loop header
LB: loop body
LE: loop exit
PB: predicated region body
PF: predicated region fallthrough
CT: control target
= control target key end

     0   :  { %15 = vsyncpa [#allocation7], 0  ;;  %s5018_s0 = inlined_call_operand.vmem [shape: f32[2,16,256], index: 0, kind: input, shape index: {}]   ;;  %s5019_s1 = inlined_call_operand.vmem [shape: f32[2,16,128], index: 1, kind: input, shape index: {}]   ;;  %s5020_s2 = inlined_call_operand.vmem [shape: f32[64,16], index: 2, kind: input, shape index: {}]   ;;  %s5021_s3 = inlined_call_operand.vmem [shape: f32[32,1], index: 3, kind: input, shape index: {}]   ;;  %s5022_s4 = inlined_call_operand.vmem [shape: f32[32,32], index: 4, kind: input, shape index: {}]   ;;  %s5023_s5 = inlined_call_operand.vmem [shape: f32[32,1], index: 5, kind: input, shape index: {}]   ;;  %s5024_s6 = inlined_call_operand.vmem [shape: f32[32,1], index: 6, kind: input, shape index: {}]   ;;  %s5025_s7 = inlined_call_operand.vmem [shape: f32[32,1], index: 7, kind: input, shape index: {}]   ;;  %s5026_s8 = inlined_call_operand.vmem [shape: f32[32,4], index: 8, kind: input, shape index: {}]   ;;  %s5027_s9 = inlined_call_operand.vmem [shape: f32[4,32], index: 9, kind: input, shape index: {}]   ;;  %s5028_s10 = inlined_call_operand.hbm [shape: f32[2,32,256], index: 10, kind: output, shape index: {}]  }
   0x1   :  { %17 = vsyncpa [#allocation7 + $0x1], 0  ;;  %s4284_s13 = smov 0   ;;  %s4286_s14 = smov 0  }
   0x2   :  { %s4288_s15 = smov 0   ;;  %s4290_s16 = smov 0  }
   0x3 LB: > { %s4305_s17 = sadd.s32 4294967295, %s4218_s16   ;;  %s3077_s18 = sadd.s32 4294967294, %s4218_s16   ;;  %s4218_s16 = sphi %s4290_s16, %s5058_s16   ;;  %s4214_s15 = sphi %s4288_s15, %s5057_s15   ;;  %s4210_s14 = sphi %s4286_s14, %s5056_s14   ;;  %s4206_s13 = sphi %s4284_s13, %s5055_s13  }
   0x4   : > { %s4309_s19 = sadd.s32 1, %s4218_s16   ;;  %s250_s20 = sadd.s32 1, %s4214_s15 }
   0x5   : > { %s247_s21 = ssub.s32 %s4218_s16, %s4309_s19  ;;  %p260_p0 = scmp.ne.s32.totalorder %s4214_s15, %s4210_s14 }
   0x6   : > { %p248_p1 = scmp.eq.s32.totalorder %s247_s21, 0  ;;  %p261_p2 = scmp.eq.s32.totalorder %s4305_s17, 1 }
   0x7   : > { %p266_p3 = scmp.ne.s32.totalorder %s4210_s14, %s4206_s13  ;;  %p267_p4 = scmp.eq.s32.totalorder %s3077_s18, 1 }
   0x8   : > { %s4320_s22 = scalar_select %p248_p1, %s4214_s15, %s250_s20  }
   0x9   : > { %p4322_p5 = por %p261_p2, %p260_p0  ;;  %p4326_p6 = por %p267_p4, %p266_p3 }
   0xa   : > { %p3080_p7 = scmp.ge.s32.totalorder %s4218_s16, 1  ;;  %p325_p8 = scmp.lt.s32.totalorder %s4218_s16, 3 }
   0xc   : > { %p326_p9 = pnand %p3080_p7, %p325_p8 }
   0xe   : > { %329 = sbr.rel (%p326_p9) target bundleno = 2566 (0xa06), region = 60 }
  0x15   : > { %p368_p10 = scmp.lt.s32.totalorder %s4305_s17, 1  ;;  %vm386_vm0 = vcmask 130048   ;;  %v496_v0 = vld [vmem:[%s5020_s2] sm:$0xff]  ;;  %v5029_v1 = vmov 0.0   ;;  %v497_v11 = vld [vmem:[%s5020_s2 + $0x8] sm:$0xff]  ;;  %v498_v12 = vld [vmem:[%s5020_s2 + $0x10] sm:$0xff] }
  0x16   : > { %3403 = vmatprep.mubr.msk.f32.mxu1 %vm386_vm0, %v496_v0  ;;  %463 = vmatprep.mubr.f32.mxu0 %v5029_v1  ;;  %v499_v13 = vld [vmem:[%s5020_s2 + $0x18] sm:$0xff]  ;;  %v500_v14 = vld [vmem:[%s5020_s2 + $0x20] sm:$0xff]  ;;  %v501_v15 = vld [vmem:[%s5020_s2 + $0x28] sm:$0xff]  ;;  %v4221_v34 = vmov 0   ;;  %vm732_vm1 = vcmask 261120   ;;  %vm4223_vm2 = vmmov 0  }
  0x17   : > { %s369_s27 = scalar_select %p368_p10, %s4305_s17, 1  ;;  %v502_v16 = vld [vmem:[%s5020_s2 + $0x30] sm:$0xff]  ;;  %v503_v17 = vld [vmem:[%s5020_s2 + $0x38] sm:$0xff]  ;;  %v1539_v35 = vld [vmem:[%s5021_s3 + $0x8] sm:$0xff]  ;;  %vm2683_vm5 = vcmask 31744   ;;  %vm2696_vm6 = vcmask 1043456  }
  0x18   : > { %v1540_v36 = vld [vmem:[%s5021_s3 + $0x10] sm:$0xff]  ;;  %v1541_v37 = vld [vmem:[%s5021_s3 + $0x18] sm:$0xff]  ;;  %v1538_v39 = vld [vmem:[%s5021_s3] sm:$0xff]  ;;  %s365_s20 = sand.u32 1, %s4210_s14   ;;  %s3172_s25 = sshll.u32 %s4305_s17, 10 }
  0x19   : > { %s3171_s28 = sshll.u32 %s369_s27, 4  ;;  %s3170_s29 = sshll.u32 %s369_s27, 5 }
  0x1a   : > { %s377_s12 = scalar_lea.vmem %s5019_s1, %s3171_s28  ;;  %s372_s21 = scalar_lea.vmem %s5018_s0, %s3170_s29 }
  0x1b   : > { %v504_v2 = vld [vmem:[%s377_s12] sm:$0xff]  ;;  %v505_v3 = vld [vmem:[%s377_s12 + $0x8] sm:$0xff]  ;;  %v385_v6 = vld [vmem:[%s372_s21 + $0x18] sm:$0xff]  ;;  %s4969_s17 = scalar_lea.hbm %s5028_s10, %s3172_s25  ;;  %s4977_s30 = scalar_lea.sflag [#allocation7], %s365_s20 }
  0x1c   : > { %v383_v4 = vld [vmem:[%s372_s21 + $0x8] sm:$0xff]  ;;  %v3819_v5 = vpack.c.bf16 %v505_v3, %v504_v2  ;;  %v382_v7 = vld [vmem:[%s372_s21] sm:$0xff]  ;;  %v384_v8 = vld [vmem:[%s372_s21 + $0x10] sm:$0xff]  ;;  %s3081_s21 = sshll.u32 %s365_s20, 6  ;;  %s4226_s12 = smov [#allocation6]  }
  0x1d   : > { %v3815_v9 = vpack.c.bf16 %v385_v6, %v383_v4  ;;  %v3817_v10 = vpack.c.bf16 %v384_v8, %v382_v7  ;;  %s367_s26 = scalar_lea.vmem [#allocation6], %s3081_s21  ;;  %s4160_s18 = sshll.u32 %s4226_s12, 4  ;;  %s4161_s18 = int_to_ptr.vmem [resolvable:$false] %s4160_s18 }
  0x1e   : > { %3820 = vmatprep.subr.bf16.mxu1 %v3819_v5  ;;  %s3003_s27 = sshll.u32 %s367_s26, 4  ;;  %s4162_s21 = scalar_lea.vmem %s4161_s18, 2048  ;;  %s4971_s27 = int_to_ptr.vmem [resolvable:$true] %s3003_s27 }
  0x1f   : > { %3822 = vmatpush3.bf16.msra.mxu1 %v3819_v5  ;;  %3816 = vmatprep.subr.bf16.mxu0 %v3815_v9  ;;  %s4156_s11 = scalar_lea.vmem %s4971_s27, 1024  ;;  %p4163_p0 = scmp.lt.s32.totalorder %s4971_s27, %s4161_s18 }
  0x20   : > { %3818 = vmatpush1.bf16.msra.mxu0 %v3817_v10  ;;  %p4157_p11 = scmp.ne.s32.totalorder %s4971_s27, %s4156_s11  ;;  %p4164_p1 = scmp.lt.s32.totalorder %s4162_s21, %s4156_s11 }
  0x22   : > { %3404 = vmatmul.mubr.msk.f32.vlgmr.msra.gmra.mrb[0].mxu1 %vm386_vm0, %v497_v11  ;;  %p4158_p12 = pnand %p4157_p11, %p4322_p5  ;;  %p4165_p2 = por %p4164_p1, %p4163_p0 }
  0x23   : > { %3406 = vmatprep.mubr.msk.f32.mxu1 %vm386_vm0, %v498_v12  ;;  %3086 = vmatmul.mubr.msk.f32.vlgmr.msra.gmra.mrb[0].mxu0 %vm386_vm0, %v496_v0 }
  0x24   : > { %469 = vmatprep.mubr.f32.mxu0 %v5029_v1  ;;  %p4159_p13 = pneg %p4158_p12 }
  0x26   : > { %3407 = vmatmul.mubr.msk.f32.gmra.mrb[2].mxu1 %vm386_vm0, %v499_v13  ;;  %p4166_p3 = pnand %p4165_p2, %p4159_p13 }
  0x27   : > { %3087 = vmatmul.mubr.msk.f32.gmra.mrb[2].mxu0 %vm386_vm0, %v497_v11  ;;  %3409 = vmatprep.mubr.msk.f32.mxu1 %vm386_vm0, %v500_v14 }
  0x28   : > { %475 = vmatprep.mubr.f32.mxu0 %v5029_v1 }
  0x2a   : > { %3410 = vmatmul.mubr.msk.f32.gmra.mrb[4].mxu1 %vm386_vm0, %v501_v15 }
  0x2b   : > { %3088 = vmatmul.mubr.msk.f32.gmra.mrb[4].mxu0 %vm386_vm0, %v498_v12  ;;  %3412 = vmatprep.mubr.msk.f32.mxu1 %vm386_vm0, %v502_v16  ;;  %v5031_v12 = vmov 0.0|0.0  }
  0x2c   : > { %481 = vmatprep.mubr.f32.mxu0 %v5029_v1 }
  0x2e   : > { %3413 = vmatmul.mubr.msk.f32.gmra.mrb[6].mxu1 %vm386_vm0, %v503_v17 }
  0x2f   : > { %3089 = vmatmul.mubr.msk.f32.gmra.mrb[6].mxu0 %vm386_vm0, %v499_v13 }
  0xf5   : > { %v3405_v18 = vpop.f32.mrb[0].mxu1 }
  0xf6   : > { %v596_v19 = vpop.f32.mrb[1].mxu1  ;;  %v4380_v20 = vpop.f32.mrb[0].mxu0 }
  0xf7   : > { %1053 = vxpose.xlu1.b32.start [1/4] (short) %v596_v19, 128  ;;  %700 = vxpose.xlu0.b32.start [1/4] (short) %v596_v19, 128  ;;  %v4382_v21 = vpop.f32.mrb[1].mxu0 }
  0xf8   : > { %5043 = vst [vmem:[#allocation9_spill] sm:$0xff] %v4382_v21 }
  0xf9   : > { %v3408_v22 = vpop.f32.mrb[2].mxu1 }
  0xfa   : > { %v606_v23 = vpop.f32.mrb[3].mxu1  ;;  %v4384_v24 = vpop.f32.mrb[2].mxu0 }
  0xfb   : > { %1054 = vxpose.xlu1.b32.cont [2/4] (short) %v3405_v18, 128  ;;  %701 = vxpose.xlu0.b32.cont [2/4] (short) %v3405_v18, 128  ;;  %v3823_v25 = vpack.c.bf16 %v4384_v24, %v4380_v20  ;;  %v4388_v26 = vpop.f32.mrb[3].mxu0 }
  0xfc   : > { %5044 = vst [vmem:[#allocation10_spill] sm:$0xff] %v4388_v26  ;;  %v3831_v27 = vpack.c.bf16 %v4388_v26, %v4382_v21 }
  0xfd   : > { %3824 = vmatprep.subr.bf16.mxu0 %v3823_v25  ;;  %v4413_v38 = vpop.f32.mrb[4].mxu1 }
  0xfe   : > { %v4392_v28 = vpop.f32.mrb[4].mxu0  ;;  %3832 = vmatprep.subr.bf16.mxu1 %v3831_v27  ;;  %3826 = vmatpush3.bf16.msra.mxu0 %v3823_v25  ;;  %v4418_v40 = vpop.f32.mrb[5].mxu1 }
  0xff   : > { %1055 = vxpose.xlu1.b32.cont [3/4] (short) %v606_v23, 128  ;;  %702 = vxpose.xlu0.b32.cont [3/4] (short) %v606_v23, 128  ;;  %v4394_v29 = vpop.f32.mrb[5].mxu0 }
 0x100   : > { %5045 = vst [vmem:[#allocation11_spill] sm:$0xff] %v4394_v29  ;;  %3834 = vmatpush3.bf16.msra.mxu1 %v3831_v27 }
 0x101   : > { %v4420_v41 = vpop.f32.mrb[6].mxu1 }
 0x102   : > { %v4396_v30 = vpop.f32.mrb[6].mxu0  ;;  %v4422_v42 = vpop.f32.mrb[7].mxu1 }
 0x103   : > { %1056 = vxpose.xlu1.b32.end [4/4] (short) %v3408_v22, 128  ;;  %703 = vxpose.xlu0.b32.end [4/4] (short) %v3408_v22, 128  ;;  %v3827_v31 = vpack.c.bf16 %v4396_v30, %v4392_v28  ;;  %v4400_v32 = vpop.f32.mrb[7].mxu0 }
 0x104   : > { %5046 = vst [vmem:[#allocation12_spill] sm:$0xff] %v4400_v32  ;;  %v3835_v33 = vpack.c.bf16 %v4400_v32, %v4394_v29 }
 0x105   : > { %3828 = vmatprep.subr.bf16.mxu0 %v3827_v31 }
 0x106   : > { %3836 = vmatprep.subr.bf16.mxu1 %v3835_v33  ;;  %3830 = vmatpush3.bf16.msra.mxu0 %v3827_v31 }
 0x107   : > { %3838 = vmatpush3.bf16.msra.mxu1 %v3835_v33  ;;  %3839 = vmatprep.subr.bf16.mxu0 %v5031_v12 }
 0x108   : > { %3863 = vmatprep.subr.bf16.mxu1 %v5031_v12 }
 0x121   : > { %4083 = vset.pattern.permute.xlu1 %v4221_v34 }
 0x12c   : > { %4082 = vset.pattern.permute.xlu0 %v4221_v34 }
 0x151   : > { %1549 = vperm.xlu1 %4083, %v1539_v35  }
 0x155   : > { %1554 = vperm.xlu1 %4083, %v1540_v36  }
 0x159   : > { %1559 = vperm.xlu1 %4083, %v1541_v37  }
 0x15c   : > { %1544 = vperm.xlu0 %4082, %v1538_v39  }
 0x177   : > { %v1069_v43 = vpop.trf.xlu1  ;;  %v716_v44 = vpop.trf.xlu0 }
 0x178   : > { %3423 = vmatprep.mubr.msk.f32.mxu0 %vm732_vm1, %v716_v44  ;;  %3455 = vmatprep.mubr.msk.f32.mxu1 %vm732_vm1, %v1069_v43 }
 0x17b   : > { %v1070_v45 = vpop.trf.xlu1  ;;  %v717_v46 = vpop.trf.xlu0 }
 0x17c   : > { %3424 = vmatmul.mubr.msk.f32.vlgmr.msra.gmra.mrb[8].mxu0 %vm732_vm1, %v717_v46  ;;  %3456 = vmatmul.mubr.msk.f32.vlgmr.msra.gmra.mrb[8].mxu1 %vm732_vm1, %v1070_v45 }
 0x17f   : > { %v1071_v47 = vpop.trf.xlu1  ;;  %v718_v48 = vpop.trf.xlu0 }
 0x180   : > { %3426 = vmatprep.mubr.msk.f32.mxu0 %vm732_vm1, %v718_v48  ;;  %3458 = vmatprep.mubr.msk.f32.mxu1 %vm732_vm1, %v1071_v47 }
 0x183   : > { %v1072_v49 = vpop.trf.xlu1  ;;  %v719_v50 = vpop.trf.xlu0 }
 0x184   : > { %3427 = vmatmul.mubr.msk.f32.gmra.mrb[10].mxu0 %vm732_vm1, %v719_v50  ;;  %3459 = vmatmul.mubr.msk.f32.gmra.mrb[10].mxu1 %vm732_vm1, %v1072_v49 }
 0x187   : > { %v1073_v51 = vpop.trf.xlu1  ;;  %v720_v52 = vpop.trf.xlu0 }
 0x188   : > { %3429 = vmatprep.mubr.msk.f32.mxu0 %vm732_vm1, %v720_v52  ;;  %3461 = vmatprep.mubr.msk.f32.mxu1 %vm732_vm1, %v1073_v51 }
 0x18b   : > { %v1074_v53 = vpop.trf.xlu1  ;;  %v721_v54 = vpop.trf.xlu0 }
 0x18c   : > { %3430 = vmatmul.mubr.msk.f32.gmra.mrb[12].mxu0 %vm732_vm1, %v721_v54  ;;  %3462 = vmatmul.mubr.msk.f32.gmra.mrb[12].mxu1 %vm732_vm1, %v1074_v53 }
 0x18f   : > { %v1075_v55 = vpop.trf.xlu1  ;;  %v722_v56 = vpop.trf.xlu0 }
 0x190   : > { %3432 = vmatprep.mubr.msk.f32.mxu0 %vm732_vm1, %v722_v56  ;;  %3464 = vmatprep.mubr.msk.f32.mxu1 %vm732_vm1, %v1075_v55 }
 0x193   : > { %v1076_v57 = vpop.trf.xlu1  ;;  %v723_v58 = vpop.trf.xlu0 }
 0x194   : > { %3433 = vmatmul.mubr.msk.f32.gmra.mrb[14].mxu0 %vm732_vm1, %v723_v58  ;;  %3465 = vmatmul.mubr.msk.f32.gmra.mrb[14].mxu1 %vm732_vm1, %v1076_v57 }
 0x197   : > { %v1077_v59 = vpop.trf.xlu1  ;;  %v724_v60 = vpop.trf.xlu0 }
 0x198   : > { %3435 = vmatprep.mubr.msk.f32.mxu0 %vm732_vm1, %v724_v60  ;;  %3467 = vmatprep.mubr.msk.f32.mxu1 %vm732_vm1, %v1077_v59 }
 0x19b   : > { %v1078_v61 = vpop.trf.xlu1  ;;  %v725_v62 = vpop.trf.xlu0 }
 0x19c   : > { %3436 = vmatmul.mubr.msk.f32.gmra.mrb[16].mxu0 %vm732_vm1, %v725_v62  ;;  %3468 = vmatmul.mubr.msk.f32.gmra.mrb[16].mxu1 %vm732_vm1, %v1078_v61 }
 0x19f   : > { %v1079_v63 = vpop.trf.xlu1  ;;  %v726_v0 = vpop.trf.xlu0 }
 0x1a0   : > { %3438 = vmatprep.mubr.msk.f32.mxu0 %vm732_vm1, %v726_v0  ;;  %3470 = vmatprep.mubr.msk.f32.mxu1 %vm732_vm1, %v1079_v63 }
 0x1a3   : > { %v1080_v2 = vpop.trf.xlu1  ;;  %v727_v3 = vpop.trf.xlu0 }
 0x1a4   : > { %3439 = vmatmul.mubr.msk.f32.gmra.mrb[18].mxu0 %vm732_vm1, %v727_v3  ;;  %3471 = vmatmul.mubr.msk.f32.gmra.mrb[18].mxu1 %vm732_vm1, %v1080_v2 }
 0x1a7   : > { %v1081_v4 = vpop.trf.xlu1  ;;  %v728_v5 = vpop.trf.xlu0 }
 0x1a8   : > { %3441 = vmatprep.mubr.msk.f32.mxu0 %vm732_vm1, %v728_v5  ;;  %3473 = vmatprep.mubr.msk.f32.mxu1 %vm732_vm1, %v1081_v4 }
 0x1ab   : > { %v1082_v6 = vpop.trf.xlu1  ;;  %v729_v7 = vpop.trf.xlu0 }
 0x1ac   : > { %3442 = vmatmul.mubr.msk.f32.gmra.mrb[20].mxu0 %vm732_vm1, %v729_v7  ;;  %3474 = vmatmul.mubr.msk.f32.gmra.mrb[20].mxu1 %vm732_vm1, %v1082_v6 }
 0x1af   : > { %v1083_v8 = vpop.trf.xlu1  ;;  %v730_v9 = vpop.trf.xlu0 }
 0x1b0   : > { %3444 = vmatprep.mubr.msk.f32.mxu0 %vm732_vm1, %v730_v9  ;;  %3476 = vmatprep.mubr.msk.f32.mxu1 %vm732_vm1, %v1083_v8 }
 0x1b3   : > { %v1084_v10 = vpop.trf.xlu1  ;;  %v731_v11 = vpop.trf.xlu0 }
 0x1b4   : > { %3445 = vmatmul.mubr.msk.f32.gmra.mrb[22].mxu0 %vm732_vm1, %v731_v11  ;;  %3477 = vmatmul.mubr.msk.f32.gmra.mrb[22].mxu1 %vm732_vm1, %v1084_v10 }
 0x1b5   : > { %3511 = vmatprep.mubr.msk.f32.mxu0 %vm4223_vm2, %v5029_v1  ;;  %3546 = vmatprep.mubr.msk.f32.mxu1 %vm4223_vm2, %v5029_v1 }
 0x24f   : > { %v4458_v13 = vpop.f32.mrb[8].mxu0  ;;  %v4460_v14 = vpop.f32.mrb[8].mxu1 }
 0x250   : > { %v4462_v15 = vpop.f32.mrb[9].mxu0  ;;  %v4464_v16 = vpop.f32.mrb[9].mxu1 }
 0x257   : > { %v4466_v17 = vpop.f32.mrb[10].mxu0  ;;  %v4468_v18 = vpop.f32.mrb[10].mxu1 }
 0x258   : > { %v4470_v19 = vpop.f32.mrb[11].mxu0  ;;  %v4472_v22 = vpop.f32.mrb[11].mxu1 }
 0x25f   : > { %v4474_v23 = vpop.f32.mrb[12].mxu0  ;;  %v4476_v25 = vpop.f32.mrb[12].mxu1 }
 0x260   : > { %v927_v27 = vmax.f32 %v4458_v13, %v4474_v23  ;;  %v1279_v31 = vmax.f32 %v4460_v14, %v4476_v25  ;;  %v4482_v33 = vpop.f32.mrb[13].mxu0  ;;  %v4484_v34 = vpop.f32.mrb[13].mxu1 }
 0x261   : > { %v926_v35 = vmax.f32 %v4462_v15, %v4482_v33  ;;  %v1278_v36 = vmax.f32 %v4464_v16, %v4484_v34 }
 0x267   : > { %v4490_v37 = vpop.f32.mrb[14].mxu0  ;;  %v4492_v39 = vpop.f32.mrb[14].mxu1 }
 0x268   : > { %v929_v43 = vmax.f32 %v4466_v17, %v4490_v37  ;;  %v1281_v44 = vmax.f32 %v4468_v18, %v4492_v39  ;;  %v4498_v45 = vpop.f32.mrb[15].mxu0  ;;  %v4500_v46 = vpop.f32.mrb[15].mxu1 }
 0x269   : > { %v928_v47 = vmax.f32 %v4470_v19, %v4498_v45  ;;  %v1280_v48 = vmax.f32 %v4472_v22, %v4500_v46 }
 0x26f   : > { %v4506_v49 = vpop.f32.mrb[16].mxu0  ;;  %v4508_v50 = vpop.f32.mrb[16].mxu1 }
 0x270   : > { %v931_v51 = vmax.f32 %v927_v27, %v4506_v49  ;;  %v1283_v52 = vmax.f32 %v1279_v31, %v4508_v50  ;;  %v4512_v53 = vpop.f32.mrb[17].mxu0  ;;  %v4514_v54 = vpop.f32.mrb[17].mxu1 }
 0x271   : > { %v930_v55 = vmax.f32 %v926_v35, %v4512_v53  ;;  %v1282_v56 = vmax.f32 %v1278_v36, %v4514_v54 }
 0x277   : > { %v4518_v57 = vpop.f32.mrb[18].mxu0  ;;  %v4520_v58 = vpop.f32.mrb[18].mxu1 }
 0x278   : > { %v933_v59 = vmax.f32 %v929_v43, %v4518_v57  ;;  %v1285_v60 = vmax.f32 %v1281_v44, %v4520_v58  ;;  %v4524_v61 = vpop.f32.mrb[19].mxu0  ;;  %v4526_v62 = vpop.f32.mrb[19].mxu1 }
 0x279   : > { %v932_v63 = vmax.f32 %v928_v47, %v4524_v61  ;;  %v1284_v0 = vmax.f32 %v1280_v48, %v4526_v62 }
 0x27f   : > { %v3443_v2 = vpop.f32.mrb[20].mxu0  ;;  %v3475_v3 = vpop.f32.mrb[20].mxu1 }
 0x280   : > { %v4534_v4 = vadd.f32 -1e+30, %v3443_v2  ;;  %v4536_v5 = vadd.f32 -1e+30, %v3475_v3  ;;  %v907_v6 = vpop.f32.mrb[21].mxu0  ;;  %v1259_v7 = vpop.f32.mrb[21].mxu1 }
 0x281   : > { %v4538_v8 = vadd.f32 -1e+30, %v907_v6  ;;  %v4540_v9 = vadd.f32 -1e+30, %v1259_v7 }
 0x282   : > { %v935_v10 = vmax.f32 %v931_v51, %v4534_v4  ;;  %v1287_v11 = vmax.f32 %v1283_v52, %v4536_v5 }
 0x283   : > { %v934_v27 = vmax.f32 %v930_v55, %v4538_v8  ;;  %v1286_v31 = vmax.f32 %v1282_v56, %v4540_v9 }
 0x285   : > { %v938_v35 = vmax.f32 %v934_v27, %v935_v10  ;;  %v1290_v36 = vmax.f32 %v1286_v31, %v1287_v11 }
 0x287   : > { %v3446_v43 = vpop.f32.mrb[22].mxu0  ;;  %v3478_v44 = vpop.f32.mrb[22].mxu1 }
 0x288   : > { %v4546_v47 = vadd.f32 -1e+30, %v3446_v43  ;;  %v4548_v48 = vadd.f32 -1e+30, %v3478_v44  ;;  %v917_v2 = vpop.f32.mrb[23].mxu0  ;;  %v1269_v3 = vpop.f32.mrb[23].mxu1 }
 0x289   : > { %v4550_v6 = vadd.f32 -1e+30, %v917_v2  ;;  %v4552_v7 = vadd.f32 -1e+30, %v1269_v3 }
 0x28a   : > { %v937_v51 = vmax.f32 %v933_v59, %v4546_v47  ;;  %v1289_v52 = vmax.f32 %v1285_v60, %v4548_v48 }
 0x28b   : > { %v936_v55 = vmax.f32 %v932_v63, %v4550_v6  ;;  %v1288_v56 = vmax.f32 %v1284_v0, %v4552_v7 }
 0x28d   : > { %v939_v10 = vmax.f32 %v936_v55, %v937_v51  ;;  %v1291_v11 = vmax.f32 %v1288_v56, %v1289_v52 }
 0x28f   : > { %v940_v27 = vmax.f32 %v938_v35, %v939_v10  ;;  %v1292_v31 = vmax.f32 %v1290_v36, %v1291_v11 }
 0x291   : > { %v941_v43 = vrot.slane %v940_v27, 4  ;;  %v1293_v44 = vrot.slane %v1292_v31, 4 }
 0x293   : > { %v942_v1 = vmax.f32 %v940_v27, %v941_v43  ;;  %v1294_v12 = vmax.f32 %v1292_v31, %v1293_v44 }
 0x295   : > { %v943_v2 = vrot.slane %v942_v1, 2  ;;  %v1295_v29 = vrot.slane %v1294_v12, 2 }
 0x297   : > { %v944_v3 = vmax.f32 %v942_v1, %v943_v2  ;;  %v1296_v32 = vmax.f32 %v1294_v12, %v1295_v29  ;;  %v2011_v1 = vld [vmem:[%s5023_s5] sm:$0xff] }
 0x298   : > { %2017 = vperm.xlu1 %4083, %v2011_v1  }
 0x299   : > { %v945_v21 = vrot.slane %v944_v3, 1  ;;  %v1297_v59 = vrot.slane %v1296_v32, 1 }
 0x29b   : > { %v4558_v26 = vmax.f32 %v944_v3, %v945_v21  ;;  %v4560_v60 = vmax.f32 %v1296_v32, %v1297_v59  ;;  %v2012_v21 = vld [vmem:[%s5023_s5 + $0x8] sm:$0xff] }
 0x29c   : > { %2022 = vperm.xlu0 %4082, %v2012_v21  }
 0x29d   : > { %v947_v63 = vsub.f32 %v4462_v15, %v4558_v26  ;;  %v948_v0 = vsub.f32 %v4458_v13, %v4558_v26  ;;  %v949_v35 = vsub.f32 %v4470_v19, %v4558_v26  ;;  %v950_v36 = vsub.f32 %v4466_v17, %v4558_v26 }
 0x29e   : > { %v951_v29 = vsub.f32 %v4482_v33, %v4558_v26  ;;  %v952_v32 = vsub.f32 %v4474_v23, %v4558_v26  ;;  %v953_v12 = vsub.f32 %v4498_v45, %v4558_v26  ;;  %v954_v13 = vsub.f32 %v4490_v37, %v4558_v26  ;;  %v2013_v23 = vld [vmem:[%s5023_s5 + $0x10] sm:$0xff] }
 0x29f   : > { %v955_v15 = vsub.f32 %v4512_v53, %v4558_v26  ;;  %v956_v17 = vsub.f32 %v4506_v49, %v4558_v26  ;;  %v957_v19 = vsub.f32 %v4524_v61, %v4558_v26  ;;  %v958_v33 = vsub.f32 %v4518_v57, %v4558_v26  ;;  %v2014_v57 = vld [vmem:[%s5023_s5 + $0x18] sm:$0xff]  ;;  %2027 = vperm.xlu1 %4083, %v2013_v23  }
 0x2a0   : > { %v959_v37 = vsub.f32 %v4538_v8, %v4558_v26  ;;  %v960_v45 = vsub.f32 %v4534_v4, %v4558_v26  ;;  %v961_v49 = vsub.f32 %v4550_v6, %v4558_v26  ;;  %v962_v53 = vsub.f32 %v4546_v47, %v4558_v26  ;;  %2032 = vperm.xlu0 %4082, %v2014_v57  }
 0x2a1   : > { %v963_v61 = vmul.f32 1.442695, %v947_v63  ;;  %v965_v51 = vmul.f32 1.442695, %v948_v0  ;;  %v967_v52 = vmul.f32 1.442695, %v949_v35  ;;  %v1299_v55 = vsub.f32 %v4464_v16, %v4560_v60 }
 0x2a2   : > { %v969_v8 = vmul.f32 1.442695, %v950_v36  ;;  %v1300_v4 = vsub.f32 %v4460_v14, %v4560_v60  ;;  %v971_v6 = vmul.f32 1.442695, %v951_v29  ;;  %v973_v26 = vmul.f32 1.442695, %v952_v32 }
 0x2a3   : > { %4084 = vpow2.f32 %v963_v61  ;;  %v975_v47 = vmul.f32 1.442695, %v953_v12  ;;  %v977_v56 = vmul.f32 1.442695, %v954_v13  ;;  %v979_v10 = vmul.f32 1.442695, %v955_v15  ;;  %1712 = vperm.xlu1 %4083, %v2011_v1  }
 0x2a4   : > { %4086 = vpow2.f32 %v965_v51  ;;  %v981_v11 = vmul.f32 1.442695, %v956_v17  ;;  %v983_v27 = vmul.f32 1.442695, %v957_v19  ;;  %v985_v31 = vmul.f32 1.442695, %v958_v33  ;;  %1717 = vperm.xlu0 %4082, %v2012_v21  }
 0x2a5   : > { %4088 = vpow2.f32 %v967_v52  ;;  %v1301_v16 = vsub.f32 %v4472_v22, %v4560_v60  ;;  %v1302_v14 = vsub.f32 %v4468_v18, %v4560_v60  ;;  %v1303_v43 = vsub.f32 %v4484_v34, %v4560_v60 }
 0x2a6   : > { %4090 = vpow2.f32 %v969_v8  ;;  %v1304_v44 = vsub.f32 %v4476_v25, %v4560_v60  ;;  %v1305_v2 = vsub.f32 %v4500_v46, %v4560_v60  ;;  %v1306_v3 = vsub.f32 %v4492_v39, %v4560_v60 }
 0x2a7   : > { %4092 = vpow2.f32 %v971_v6  ;;  %v1307_v22 = vsub.f32 %v4514_v54, %v4560_v60  ;;  %v1308_v18 = vsub.f32 %v4508_v50, %v4560_v60  ;;  %v1309_v34 = vsub.f32 %v4526_v62, %v4560_v60  ;;  %1722 = vperm.xlu1 %4083, %v2013_v23  }
 0x2a8   : > { %4094 = vpow2.f32 %v973_v26  ;;  %v1310_v25 = vsub.f32 %v4520_v58, %v4560_v60  ;;  %v1311_v46 = vsub.f32 %v4540_v9, %v4560_v60  ;;  %v1312_v39 = vsub.f32 %v4536_v5, %v4560_v60  ;;  %1727 = vperm.xlu0 %4082, %v2014_v57  }
 0x2a9   : > { %4096 = vpow2.f32 %v975_v47  ;;  %v1313_v54 = vsub.f32 %v4552_v7, %v4560_v60  ;;  %v1314_v50 = vsub.f32 %v4548_v48, %v4560_v60  ;;  %v987_v59 = vmul.f32 1.442695, %v959_v37 }
 0x2aa   : > { %4098 = vpow2.f32 %v977_v56  ;;  %v989_v63 = vmul.f32 1.442695, %v960_v45  ;;  %v991_v35 = vmul.f32 1.442695, %v961_v49  ;;  %v993_v1 = vmul.f32 1.442695, %v962_v53 }
 0x2ab   : > { %4100 = vpow2.f32 %v979_v10  ;;  %v1315_v32 = vmul.f32 1.442695, %v1299_v55  ;;  %v1317_v13 = vmul.f32 1.442695, %v1300_v4  ;;  %v1319_v33 = vmul.f32 1.442695, %v1301_v16 }
 0x2ac   : > { %4102 = vpow2.f32 %v981_v11  ;;  %v1321_v45 = vmul.f32 1.442695, %v1302_v14  ;;  %v1323_v57 = vmul.f32 1.442695, %v1303_v43  ;;  %v5047_v61 = vmov 0.0|0.0  }
 0x2ad   : > { %v4085_v0 = vpop.eup %4084  ;;  %4104 = vpow2.f32 %v983_v27  ;;  %v1325_v55 = vmul.f32 1.442695, %v1304_v44  ;;  %v1327_v6 = vmul.f32 1.442695, %v1305_v2  ;;  %v1329_v56 = vmul.f32 1.442695, %v1306_v3 }
 0x2ae   : > { %v4087_v36 = vpop.eup %4086  ;;  %4106 = vpow2.f32 %v985_v31  ;;  %v1331_v27 = vmul.f32 1.442695, %v1307_v22  ;;  %v1333_v14 = vmul.f32 1.442695, %v1308_v18  ;;  %v1335_v2 = vmul.f32 1.442695, %v1309_v34 }
 0x2af   : > { %v4089_v21 = vpop.eup %4088  ;;  %4108 = vpow2.f32 %v987_v59  ;;  %v995_v29 = vadd.f32 %v4087_v36, %v4085_v0  ;;  %v4638_v15 = vpack.c.bf16 %v4087_v36, %v4085_v0  ;;  %v1337_v3 = vmul.f32 1.442695, %v1310_v25 }
 0x2b0   : > { %v4091_v12 = vpop.eup %4090  ;;  %4110 = vpow2.f32 %v989_v63  ;;  %v1339_v18 = vmul.f32 1.442695, %v1311_v46  ;;  %v1341_v58 = vmul.f32 1.442695, %v1312_v39  ;;  %v1343_v36 = vmul.f32 1.442695, %v1313_v54 }
 0x2b1   : > { %v4093_v17 = vpop.eup %4092  ;;  %4112 = vpow2.f32 %v991_v35  ;;  %v996_v19 = vadd.f32 %v4089_v21, %v995_v29  ;;  %v4640_v23 = vpack.c.bf16 %v4091_v12, %v4089_v21  ;;  %3865 = vmatpush3.bf16.xpose.msra.mxu1 %v4638_v15  ;;  %v1345_v46 = vmul.f32 1.442695, %v1314_v50 }
 0x2b2   : > { %v4095_v37 = vpop.eup %4094  ;;  %4114 = vpow2.f32 %v993_v1  ;;  %3866 = vmatprep.subr.bf16.mxu1 %v5047_v61 }
 0x2b3   : > { %v4097_v49 = vpop.eup %4096  ;;  %v997_v53 = vadd.f32 %v4091_v12, %v996_v19  ;;  %4116 = vpow2.f32 %v1315_v32  ;;  %v4644_v51 = vpack.c.bf16 %v4095_v37, %v4093_v17 }
 0x2b4   : > { %v4099_v52 = vpop.eup %4098  ;;  %4118 = vpow2.f32 %v1317_v13 }
 0x2b5   : > { %v4101_v8 = vpop.eup %4100  ;;  %v998_v4 = vadd.f32 %v4093_v17, %v997_v53  ;;  %4120 = vpow2.f32 %v1319_v33  ;;  %v4646_v26 = vpack.c.bf16 %v4099_v52, %v4097_v49 }
 0x2b6   : > { %v4103_v47 = vpop.eup %4102  ;;  %4122 = vpow2.f32 %v1321_v45 }
 0x2b7   : > { %v4105_v10 = vpop.eup %4104  ;;  %v999_v11 = vadd.f32 %v4095_v37, %v998_v4  ;;  %4124 = vpow2.f32 %v1323_v57  ;;  %v4648_v31 = vpack.c.bf16 %v4103_v47, %v4101_v8 }
 0x2b8   : > { %v4107_v16 = vpop.eup %4106  ;;  %4126 = vpow2.f32 %v1325_v55 }
 0x2b9   : > { %v4109_v43 = vpop.eup %4108  ;;  %v1000_v44 = vadd.f32 %v4097_v49, %v999_v11  ;;  %4128 = vpow2.f32 %v1327_v6  ;;  %v4653_v59 = vpack.c.bf16 %v4107_v16, %v4105_v10  ;;  %3868 = vmatpush3.bf16.xpose.msra.mxu1 %v4640_v23 }
 0x2ba   : > { %v4111_v63 = vpop.eup %4110  ;;  %4130 = vpow2.f32 %v1329_v56  ;;  %3869 = vmatprep.subr.bf16.mxu1 %v5047_v61 }
 0x2bb   : > { %v4113_v22 = vpop.eup %4112  ;;  %v1001_v0 = vadd.f32 %v4099_v52, %v1000_v44  ;;  %4132 = vpow2.f32 %v1331_v27  ;;  %v4663_v62 = vpack.c.bf16 %v4111_v63, %v4109_v43 }
 0x2bc   : > { %v4115_v34 = vpop.eup %4114  ;;  %4134 = vpow2.f32 %v1333_v14 }
 0x2bd   : > { %v4117_v25 = vpop.eup %4116  ;;  %v1002_v35 = vadd.f32 %v4101_v8, %v1001_v0  ;;  %4136 = vpow2.f32 %v1335_v2  ;;  %v4671_v1 = vpack.c.bf16 %v4115_v34, %v4113_v22 }
 0x2be   : > { %v4119_v9 = vpop.eup %4118  ;;  %4138 = vpow2.f32 %v1337_v3 }
 0x2bf   : > { %v4121_v21 = vpop.eup %4120  ;;  %v1003_v29 = vadd.f32 %v4103_v47, %v1002_v35  ;;  %4140 = vpow2.f32 %v1339_v18  ;;  %v1347_v5 = vadd.f32 %v4119_v9, %v4117_v25  ;;  %v4676_v39 = vpack.c.bf16 %v4119_v9, %v4117_v25 }
 0x2c0   : > { %v4123_v32 = vpop.eup %4122  ;;  %4142 = vpow2.f32 %v1341_v58 }
 0x2c1   : > { %v4125_v12 = vpop.eup %4124  ;;  %v1004_v13 = vadd.f32 %v4105_v10, %v1003_v29  ;;  %4144 = vpow2.f32 %v1343_v36  ;;  %v1348_v7 = vadd.f32 %v4121_v21, %v1347_v5  ;;  %3841 = vmatpush3.bf16.xpose.msra.mxu0 %v4676_v39  ;;  %v4679_v54 = vpack.c.bf16 %v4123_v32, %v4121_v21  ;;  %3871 = vmatpush3.bf16.xpose.msra.mxu1 %v4644_v51 }
 0x2c2   : > { %v4127_v17 = vpop.eup %4126  ;;  %4146 = vpow2.f32 %v1345_v46  ;;  %3842 = vmatprep.subr.bf16.mxu0 %v5047_v61  ;;  %3872 = vmatprep.subr.bf16.mxu1 %v5047_v61 }
 0x2c3   : > { %v4129_v48 = vpop.eup %4128  ;;  %v1005_v60 = vadd.f32 %v4107_v16, %v1004_v13  ;;  %v1349_v50 = vadd.f32 %v4123_v32, %v1348_v7  ;;  %v4683_v19 = vpack.c.bf16 %v4127_v17, %v4125_v12 }
 0x2c4   : > { %v4131_v33 = vpop.eup %4130 }
 0x2c5   : > { %v4133_v37 = vpop.eup %4132  ;;  %v1006_v45 = vadd.f32 %v4109_v43, %v1005_v60  ;;  %v1350_v49 = vadd.f32 %v4125_v12, %v1349_v50  ;;  %v4686_v53 = vpack.c.bf16 %v4131_v33, %v4129_v48  ;;  %v1017_v12 = vlaneseq }
 0x2c6   : > { %v4135_v57 = vpop.eup %4134 }
 0x2c7   : > { %v4137_v52 = vpop.eup %4136  ;;  %v1007_v55 = vadd.f32 %v4111_v63, %v1006_v45  ;;  %v1351_v8 = vadd.f32 %v4127_v17, %v1350_v49  ;;  %v4688_v4 = vpack.c.bf16 %v4135_v57, %v4133_v37  ;;  %vm4709_vm3 = vcmp.lt.s32.totalorder %v1017_v12, 128  ;;  %v5050_v17 = vld [vmem:[#allocation10_spill] sm:$0xff] }
 0x2c8   : > { %v4139_v6 = vpop.eup %4138  ;;  %v1039_v45 = vand.u32 127, %v1017_v12 }
 0x2c9   : > { %v4141_v47 = vpop.eup %4140  ;;  %v1008_v56 = vadd.f32 %v4113_v22, %v1007_v55  ;;  %v1352_v10 = vadd.f32 %v4129_v48, %v1351_v8  ;;  %3844 = vmatpush3.bf16.xpose.msra.mxu0 %v4679_v54  ;;  %v4691_v11 = vpack.c.bf16 %v4139_v6, %v4137_v52  ;;  %3874 = vmatpush3.bf16.xpose.msra.mxu1 %v4646_v26  ;;  %v1567_v8 = vshrl.u32 %v1017_v12, 7  ;;  %v1705_v12 = vld [vmem:[%s5022_s4 + $0x18] sm:$0xff] }
 0x2ca   : > { %v4143_v27 = vpop.eup %4142  ;;  %3845 = vmatprep.subr.bf16.mxu0 %v5047_v61  ;;  %3875 = vmatprep.subr.bf16.mxu1 %v5047_v61  ;;  %v1389_v49 = vadd.s32 128, %v1039_v45 }
 0x2cb   : > { %v4145_v16 = vpop.eup %4144  ;;  %v1009_v14 = vadd.f32 %v4115_v34, %v1008_v56  ;;  %v1353_v43 = vadd.f32 %v4131_v33, %v1352_v10  ;;  %v4696_v44 = vpack.c.bf16 %v4143_v27, %v4141_v47 }
 0x2cc   : > { %v4147_v2 = vpop.eup %4146  ;;  %vm1390_vm4 = vcmp.lt.s32.totalorder %v1389_v49, 200 }
 0x2cd   : > { %v1010_v63 = vrot.slane %v1009_v14, 4  ;;  %v1354_v3 = vadd.f32 %v4133_v37, %v1353_v43  ;;  %v4698_v22 = vpack.c.bf16 %v4147_v2, %v4145_v16 }
 0x2cf   : > { %v1011_v0 = vadd.f32 %v1010_v63, %v1009_v14  ;;  %v1355_v18 = vadd.f32 %v4135_v57, %v1354_v3  ;;  %v1702_v3 = vld [vmem:[%s5022_s4] sm:$0xff] }
 0x2d1   : > { %v1012_v58 = vrot.slane %v1011_v0, 2  ;;  %v1356_v25 = vadd.f32 %v4137_v52, %v1355_v18  ;;  %3847 = vmatpush3.bf16.xpose.msra.mxu0 %v4683_v19  ;;  %3877 = vmatpush3.bf16.xpose.msra.mxu1 %v4648_v31 }
 0x2d2   : > { %3848 = vmatprep.subr.bf16.mxu0 %v5047_v61  ;;  %3878 = vmatprep.subr.bf16.mxu1 %v5047_v61 }
 0x2d3   : > { %v1013_v34 = vadd.f32 %v1012_v58, %v1011_v0  ;;  %v1357_v35 = vadd.f32 %v4139_v6, %v1356_v25  ;;  %v1568_v6 = vsub.s32 0, %v1567_v8 }
 0x2d5   : > { %v1014_v36 = vrot.slane %v1013_v34, 1  ;;  %v1358_v9 = vadd.f32 %v4141_v47, %v1357_v35 }
 0x2d7   : > { %v1015_v46 = vadd.f32 %v1014_v36, %v1013_v34  ;;  %v1359_v21 = vadd.f32 %v4143_v27, %v1358_v9 }
 0x2d9   : > { %4148 = vrcp.f32 %v1015_v46  ;;  %v1360_v29 = vadd.f32 %v4145_v16, %v1359_v21  ;;  %3850 = vmatpush3.bf16.xpose.msra.mxu0 %v4686_v53  ;;  %3880 = vmatpush3.bf16.xpose.msra.mxu1 %v4653_v59 }
 0x2da   : > { %3851 = vmatprep.subr.bf16.mxu0 %v5047_v61  ;;  %3881 = vmatprep.subr.bf16.mxu1 %v5047_v61 }
 0x2db   : > { %v1361_v5 = vadd.f32 %v4147_v2, %v1360_v29 }
 0x2dd   : > { %v1362_v32 = vrot.slane %v1361_v5, 4 }
 0x2df   : > { %v1363_v13 = vadd.f32 %v1362_v32, %v1361_v5  ;;  %v1703_v5 = vld [vmem:[%s5022_s4 + $0x8] sm:$0xff]  ;;  %v1704_v32 = vld [vmem:[%s5022_s4 + $0x10] sm:$0xff] }
 0x2e1   : > { %v1364_v7 = vrot.slane %v1363_v13, 2  ;;  %3853 = vmatpush3.bf16.xpose.msra.mxu0 %v4688_v4  ;;  %3883 = vmatpush3.bf16.xpose.msra.mxu1 %v4663_v62 }
 0x2e2   : > { %3854 = vmatprep.subr.bf16.mxu0 %v5047_v61  ;;  %3884 = vmatprep.subr.bf16.mxu1 %v5047_v61 }
 0x2e3   : > { %v4149_v48 = vpop.eup %4148  ;;  %v1365_v60 = vadd.f32 %v1364_v7, %v1363_v13 }
 0x2e4   : > { %1021 = vst.msk [vmem:[#allocation4] sm:$0x1] %vm4709_vm3, %v4149_v48 }
 0x2e5   : > { %v1366_v50 = vrot.slane %v1365_v60, 1 }
 0x2e7   : > { %v1367_v33 = vadd.f32 %v1366_v50, %v1365_v60  ;;  %v5051_v60 = vld [vmem:[#allocation9_spill] sm:$0xff] }
 0x2e9   : > { %4150 = vrcp.f32 %v1367_v33  ;;  %3856 = vmatpush3.bf16.xpose.msra.mxu0 %v4691_v11  ;;  %3886 = vmatpush3.bf16.xpose.msra.mxu1 %v4671_v1 }
 0x2ea   : > { %3857 = vmatprep.subr.bf16.mxu0 %v5047_v61 }
 0x2f0   : > { %3547 = vmatmul.mubr.f32.vlgmr.msra.gmra.mrb[24].mxu1 %v4149_v48 }
 0x2f1   : > { %3859 = vmatpush3.bf16.xpose.msra.mxu0 %v4696_v44  ;;  %3595 = vmatprep.mubr.msk.f32.mxu1 %vm732_vm1, %v1702_v3 }
 0x2f2   : > { %3860 = vmatprep.subr.bf16.mxu0 %v5047_v61 }
 0x2f3   : > { %v4151_v37 = vpop.eup %4150 }
 0x2f4   : > { %1370 = vst.msk [vmem:[#allocation4 + $0x1] sm:$0x1] %vm4709_vm3, %v4151_v37 }
 0x2f9   : > { %3862 = vmatpush3.bf16.xpose.msra.mxu0 %v4698_v22 }
 0x2fa   : > { %3888 = vmatprep.subr.bf16.mxu0 %v4638_v15 }
 0x300   : > { %3512 = vmatmul.mubr.msk.f32.vlgmr.msra.gmra.mrb[24].mxu0 %vm1390_vm4, %v4151_v37 }
 0x301   : > { %3890 = vmatpush3.bf16.msra.mxu0 %v4638_v15 }
 0x302   : > { %3892 = vmatprep.subr.bf16.mxu0 %v4640_v23 }
 0x305   : > { %3894 = vmatpush3.bf16.msra.mxu0 %v4640_v23 }
 0x306   : > { %3896 = vmatprep.subr.bf16.mxu0 %v4644_v51 }
 0x309   : > { %3898 = vmatpush3.bf16.msra.mxu0 %v4644_v51 }
 0x30a   : > { %3900 = vmatprep.subr.bf16.mxu0 %v4646_v26 }
 0x30d   : > { %3902 = vmatpush3.bf16.msra.mxu0 %v4646_v26  ;;  %v1550_v26 = vpop.permute.xlu1 %1549 }
 0x30e   : > { %3904 = vmatprep.subr.bf16.mxu0 %v4648_v31 }
 0x311   : > { %3906 = vmatpush3.bf16.msra.mxu0 %v4648_v31  ;;  %v1555_v31 = vpop.permute.xlu1 %1554 }
 0x312   : > { %3908 = vmatprep.subr.bf16.mxu0 %v4653_v59  ;;  %v1564_v10 = vadd.f32 %v1555_v31, %v4422_v42 }
 0x315   : > { %3910 = vmatpush3.bf16.msra.mxu0 %v4653_v59  ;;  %v1545_v59 = vpop.permute.xlu0 %1544  ;;  %v1560_v47 = vpop.permute.xlu1 %1559 }
 0x316   : > { %3912 = vmatprep.subr.bf16.mxu0 %v4663_v62  ;;  %v1565_v27 = vadd.f32 %v4420_v41, %v1560_v47 }
 0x319   : > { %3914 = vmatpush3.bf16.msra.mxu0 %v4663_v62  ;;  %v1563_v62 = vadd.f32 %v4413_v38, %v1550_v26  ;;  %v5053_v26 = vld [vmem:[#allocation11_spill] sm:$0xff]  ;;  %v2018_v31 = vpop.permute.xlu1 %2017 }
 0x31a   : > { %3916 = vmatprep.subr.bf16.mxu0 %v4671_v1 }
 0x31b   : > { %v2023_v8 = vpop.permute.xlu0 %2022 }
 0x31d   : > { %3918 = vmatpush3.bf16.msra.mxu0 %v4671_v1  ;;  %v1562_v1 = vadd.f32 %v1545_v59, %v4418_v40  ;;  %v3131_v40 = vld [vmem:[#allocation4] ss:$0 sm:$0xff] }
 0x3c3   : > { %v1528_v15 = vpop.f32.mrb[24].mxu1 }
 0x3c4   : > { %v3548_v23 = vpop.f32.mrb[25].mxu1 }
 0x3c5   : > { %v5052_v23 = vld [vmem:[#allocation12_spill] sm:$0xff] }
 0x3d3   : > { %v1458_v51 = vpop.f32.mrb[24].mxu0 }
 0x3d4   : > { %v1529_v57 = vadd.f32 %v1528_v15, %v1458_v51  ;;  %v3513_v52 = vpop.f32.mrb[25].mxu0 }
 0x3d6   : > { %v1532_v55 = vadd.f32 1e-09, %v1529_v57 }
 0x3d8   : > { %4152 = vrcp.f32 %v1532_v55  ;;  %v4225_v55 = vmov 1.0  }
 0x3e2   : > { %v4153_v56 = vpop.eup %4152 }
 0x3e3   : > { %v1569_v16 = vrot.slane %v4153_v56, %v1568_v6  ;;  %v2028_v6 = vpop.permute.xlu1 %2027 }
 0x3e5   : > { %v1570_v14 = vmul.f32 %v1569_v16, %v1562_v1  ;;  %v1571_v43 = vmul.f32 %v1569_v16, %v1563_v62  ;;  %v1572_v2 = vmul.f32 %v1569_v16, %v1564_v10  ;;  %v1573_v63 = vmul.f32 %v1569_v16, %v1565_v27  ;;  %v2033_v27 = vpop.permute.xlu0 %2032 }
 0x3e7   : > { %3581 = vmatprep.mubr.f32.mxu0 %v1570_v14 }
 0x3e8   : > { %3582 = vmatmul.mubr.f32.vlgmr.msra.gmra.mrb[26].mxu0 %v1571_v43 }
 0x3e9   : > { %3584 = vmatprep.mubr.f32.mxu0 %v1572_v2 }
 0x3ec   : > { %3585 = vmatmul.mubr.f32.gmra.mrb[28].mxu0 %v1573_v63 }
 0x3ed   : > { %3647 = vmatprep.mubr.msk.f32.mxu0 %vm732_vm1, %v1702_v3 }
 0x4bb   : > { %v3583_v38 = vpop.f32.mrb[26].mxu0 }
 0x4bc   : > { %v1691_v41 = vmul.f32 %v3583_v38, %v3131_v40  ;;  %v1664_v42 = vpop.f32.mrb[27].mxu0 }
 0x4bd   : > { %v1690_v0 = vmul.f32 %v3131_v40, %v1664_v42  ;;  %v1718_v42 = vpop.permute.xlu0 %1717 }
 0x4be   : > { %v1699_v18 = vsub.f32 %v4384_v24, %v1691_v41 }
 0x4bf   : > { %v1698_v58 = vsub.f32 %v4380_v20, %v1690_v0  ;;  %v3586_v25 = vpop.f32.mrb[28].mxu0 }
 0x4c0   : > { %v1693_v34 = vmul.f32 %v3586_v25, %v3131_v40  ;;  %v1674_v35 = vpop.f32.mrb[29].mxu0 }
 0x4c1   : > { %v1692_v36 = vmul.f32 %v3131_v40, %v1674_v35  ;;  %v3919_v9 = vpack.c.bf16 %v1699_v18, %v1698_v58  ;;  %v1728_v25 = vpop.permute.xlu0 %1727 }
 0x4c2   : > { %v1701_v46 = vsub.f32 %v4396_v30, %v1693_v34 }
 0x4c3   : > { %v1700_v21 = vsub.f32 %v4392_v28, %v1692_v36  ;;  %3920 = vmatprep.subr.bf16.mxu1 %v3919_v9 }
 0x4c4   : > { %3922 = vmatpush3.bf16.msra.mxu1 %v3919_v9 }
 0x4c5   : > { %v3923_v29 = vpack.c.bf16 %v1701_v46, %v1700_v21  ;;  %v5054_v46 = vmov 0.0  }
 0x4c7   : > { %3924 = vmatprep.subr.bf16.mxu1 %v3923_v29 }
 0x4c8   : > { %3926 = vmatpush3.bf16.msra.mxu1 %v3923_v29 }
 0x4c9   : > { %3928 = vmatprep.subr.bf16.mxu1 %v4676_v39 }
 0x4cb   : > { %3596 = vmatmul.mubr.msk.f32.vlgmr.msra.gmra.mrb[26].mxu1 %vm732_vm1, %v1703_v5 }
 0x4cc   : > { %3930 = vmatpush3.bf16.msra.mxu1 %v4676_v39  ;;  %3598 = vmatprep.mubr.msk.f32.mxu1 %vm732_vm1, %v1704_v32  ;;  %v4224_v39 = vmov 1.0|1.0  }
 0x4cd   : > { %3932 = vmatprep.subr.bf16.mxu1 %v4679_v54 }
 0x4cf   : > { %3599 = vmatmul.mubr.msk.f32.gmra.mrb[28].mxu1 %vm732_vm1, %v1705_v12 }
 0x4d0   : > { %3934 = vmatpush3.bf16.msra.mxu1 %v4679_v54  ;;  %3633 = vmatprep.mubr.f32.mxu1 %v1570_v14 }
 0x4d1   : > { %3936 = vmatprep.subr.bf16.mxu1 %v4683_v19 }
 0x4d4   : > { %3938 = vmatpush3.bf16.msra.mxu1 %v4683_v19 }
 0x4d5   : > { %3940 = vmatprep.subr.bf16.mxu1 %v4686_v53 }
 0x4d8   : > { %3942 = vmatpush3.bf16.msra.mxu1 %v4686_v53 }
 0x4d9   : > { %3944 = vmatprep.subr.bf16.mxu1 %v4688_v4 }
 0x4dc   : > { %3946 = vmatpush3.bf16.msra.mxu1 %v4688_v4 }
 0x4dd   : > { %3948 = vmatprep.subr.bf16.mxu1 %v4691_v11 }
 0x4e0   : > { %3950 = vmatpush3.bf16.msra.mxu1 %v4691_v11 }
 0x4e1   : > { %3952 = vmatprep.subr.bf16.mxu1 %v4696_v44 }
 0x4e4   : > { %3954 = vmatpush3.bf16.msra.mxu1 %v4696_v44  ;;  %v3136_v44 = vld [vmem:[#allocation4 + $0x1] ss:$0 sm:$0xff] }
 0x4e5   : > { %3956 = vmatprep.subr.bf16.mxu1 %v4698_v22 }
 0x4e8   : > { %3958 = vmatpush3.bf16.msra.mxu1 %v4698_v22 }
 0x4e9   : > { %3991 = vmatprep.subr.bf16.mxu1 %v4224_v39 }
 0x4eb   : > { %3634 = vmatmul.mubr.f32.vlgmr.msra.gmra.mrb[30].mxu1 %v1571_v43  ;;  %v1713_v43 = vpop.permute.xlu1 %1712 }
 0x4ec   : > { %3636 = vmatprep.mubr.f32.mxu1 %v1572_v2  ;;  %3992 = vmatpush3.bf16.msra.mxu1 %v4224_v39 }
 0x4ed   : > { %3993 = vmatprep.subr.bf16.mxu1 %v4224_v39 }
 0x4ef   : > { %3637 = vmatmul.mubr.f32.gmra.mrb[32].mxu1 %v1573_v63  ;;  %v1723_v0 = vpop.permute.xlu1 %1722 }
 0x4f0   : > { %3994 = vmatpush3.bf16.msra.mxu1 %v4224_v39 }
 0x4f1   : > { %3995 = vmatprep.subr.bf16.mxu1 %v4224_v39 }
 0x4f4   : > { %3996 = vmatpush3.bf16.msra.mxu1 %v4224_v39 }
 0x4f5   : > { %3997 = vmatprep.subr.bf16.mxu1 %v4224_v39 }
 0x4f8   : > { %3998 = vmatpush3.bf16.msra.mxu1 %v4224_v39 }
 0x4f9   : > { %3731 = vmatprep.subr.mxu1 %v4225_v55 }
 0x4fc   : > { %3732 = vmatpush3.msra.mxu1 %v4225_v55 }
 0x4fd   : > { %3999 = vmatprep.subr.bf16.mxu1 %v4224_v39 }
 0x59e   : > { %v4791_v54 = vpop.f32.mrb[26].mxu1 }
 0x59f   : > { %v1808_v19 = vpop.f32.mrb[27].mxu1  ;;  %v4867_v18 = vadd.f32 %v4791_v54, %v1718_v42 }
 0x5a0   : > { %v4829_v3 = vadd.f32 %v1808_v19, %v1713_v43  ;;  %v2876_v43 = vld [vmem:[%s5024_s6 + $0x18] sm:$0xff] }
 0x5a1   : > { %v1880_v34 = vmul.f32 %v4867_v18, %v4867_v18 }
 0x5a2   : > { %v4793_v53 = vpop.f32.mrb[28].mxu1  ;;  %v1879_v41 = vmul.f32 %v4829_v3, %v4829_v3 }
 0x5a3   : > { %v4795_v4 = vpop.f32.mrb[29].mxu1  ;;  %v4880_v35 = vadd.f32 %v4793_v53, %v1728_v25 }
 0x5a4   : > { %v4872_v58 = vadd.f32 %v4795_v4, %v1723_v0 }
 0x5a5   : > { %v1882_v9 = vmul.f32 %v4880_v35, %v4880_v35 }
 0x5a6   : > { %v1881_v36 = vmul.f32 %v4872_v58, %v4872_v58 }
 0x5be   : > { %v3635_v11 = vpop.f32.mrb[30].mxu1 }
 0x5bf   : > { %v1996_v22 = vmul.f32 %v3635_v11, %v3136_v44  ;;  %v1969_v13 = vpop.f32.mrb[31].mxu1 }
 0x5c0   : > { %v1995_v7 = vmul.f32 %v3136_v44, %v1969_v13  ;;  %v2679_v13 = vld [vmem:[%s5026_s8] sm:$0xff] }
 0x5c1   : > { %v2004_v48 = vsub.f32 %v5050_v17, %v1996_v22 }
 0x5c2   : > { %v2003_v50 = vsub.f32 %v5051_v60, %v1995_v7  ;;  %v3638_v33 = vpop.f32.mrb[32].mxu1 }
 0x5c3   : > { %v1998_v37 = vmul.f32 %v3638_v33, %v3136_v44  ;;  %v1979_v45 = vpop.f32.mrb[33].mxu1 }
 0x5c4   : > { %v1997_v49 = vmul.f32 %v3136_v44, %v1979_v45  ;;  %v3959_v15 = vpack.c.bf16 %v2004_v48, %v2003_v50  ;;  %v2529_v44 = vld [vmem:[%s5027_s9] sm:$0xf] }
 0x5c5   : > { %v2006_v51 = vsub.f32 %v5052_v23, %v1998_v37 }
 0x5c6   : > { %v2005_v57 = vsub.f32 %v5053_v26, %v1997_v49  ;;  %3960 = vmatprep.subr.bf16.mxu0 %v3959_v15  ;;  %v2680_v49 = vld [vmem:[%s5026_s8 + $0x8] sm:$0xff] }
 0x5c7   : > { %3962 = vmatpush3.bf16.msra.mxu0 %v3959_v15  ;;  %v2681_v15 = vld [vmem:[%s5026_s8 + $0x10] sm:$0xff] }
 0x5c8   : > { %v3963_v52 = vpack.c.bf16 %v2006_v51, %v2005_v57 }
 0x5ca   : > { %3964 = vmatprep.subr.bf16.mxu0 %v3963_v52 }
 0x5cb   : > { %3966 = vmatpush3.bf16.msra.mxu0 %v3963_v52  ;;  %v2682_v52 = vld [vmem:[%s5026_s8 + $0x18] sm:$0xff] }
 0x5cc   : > { %3967 = vmatprep.subr.bf16.mxu0 %v4224_v39 }
 0x5ce   : > { %3648 = vmatmul.mubr.msk.f32.vlgmr.msra.gmra.mrb[30].mxu0 %vm732_vm1, %v1703_v5 }
 0x5cf   : > { %3650 = vmatprep.mubr.msk.f32.mxu0 %vm732_vm1, %v1704_v32  ;;  %3968 = vmatpush3.bf16.msra.mxu0 %v4224_v39 }
 0x5d0   : > { %3969 = vmatprep.subr.bf16.mxu0 %v4224_v39 }
 0x5d2   : > { %3651 = vmatmul.mubr.msk.f32.gmra.mrb[32].mxu0 %vm732_vm1, %v1705_v12 }
 0x5d3   : > { %3970 = vmatpush3.bf16.msra.mxu0 %v4224_v39 }
 0x5d4   : > { %3971 = vmatprep.subr.bf16.mxu0 %v4224_v39 }
 0x5d7   : > { %3972 = vmatpush3.bf16.msra.mxu0 %v4224_v39 }
 0x5d8   : > { %3973 = vmatprep.subr.bf16.mxu0 %v4224_v39 }
 0x5db   : > { %3974 = vmatpush3.bf16.msra.mxu0 %v4224_v39 }
 0x5dc   : > { %3669 = vmatprep.subr.mxu0 %v4225_v55 }
 0x5df   : > { %3670 = vmatpush3.msra.mxu0 %v4225_v55 }
 0x5e0   : > { %3975 = vmatprep.subr.bf16.mxu0 %v4224_v39 }
 0x6a1   : > { %v3649_v59 = vpop.f32.mrb[30].mxu0 }
 0x6a2   : > { %v4814_v47 = vadd.f32 %v3649_v59, %v2023_v8  ;;  %v2113_v56 = vpop.f32.mrb[31].mxu0 }
 0x6a3   : > { %v4816_v62 = vadd.f32 %v2113_v56, %v2018_v31  ;;  %v2874_v56 = vld [vmem:[%s5024_s6 + $0x8] sm:$0xff] }
 0x6a4   : > { %v2356_v16 = vmul.f32 %v4814_v47, %v4814_v47 }
 0x6a5   : > { %v3652_v10 = vpop.f32.mrb[32].mxu0  ;;  %3671 = vmatprep.mubr.f32.mxu0 %v4816_v62  ;;  %v2355_v1 = vmul.f32 %v4816_v62, %v4816_v62 }
 0x6a6   : > { %v2123_v14 = vpop.f32.mrb[33].mxu0  ;;  %3672 = vmatmul.mubr.f32.vlgmr.msra.gmra.mrb[34].mxu0 %v4814_v47  ;;  %v4824_v2 = vadd.f32 %v3652_v10, %v2033_v27  ;;  %v2873_v10 = vld [vmem:[%s5024_s6] sm:$0xff] }
 0x6a7   : > { %v4826_v63 = vadd.f32 %v2123_v14, %v2028_v6  ;;  %3976 = vmatpush3.bf16.msra.mxu0 %v4224_v39  ;;  %3733 = vmatprep.mubr.f32.mxu1 %v2355_v1 }
 0x6a8   : > { %3734 = vmatmul.mubr.f32.vlgmr.msra.gmra.mrb[34].mxu1 %v2356_v16  ;;  %3977 = vmatprep.subr.bf16.mxu0 %v4224_v39  ;;  %v2358_v40 = vmul.f32 %v4824_v2, %v4824_v2 }
 0x6a9   : > { %4000 = vmatpush3.bf16.msra.mxu1 %v4224_v39  ;;  %3674 = vmatprep.mubr.f32.mxu0 %v4826_v63  ;;  %v2357_v38 = vmul.f32 %v4826_v63, %v4826_v63 }
 0x6aa   : > { %3675 = vmatmul.mubr.f32.gmra.mrb[36].mxu0 %v4824_v2  ;;  %4001 = vmatprep.subr.bf16.mxu1 %v4224_v39 }
 0x6ab   : > { %3978 = vmatpush3.bf16.msra.mxu0 %v4224_v39  ;;  %3709 = vmatprep.mubr.f32.mxu0 %v4829_v3 }
 0x6ac   : > { %3736 = vmatprep.mubr.f32.mxu1 %v2357_v38  ;;  %3979 = vmatprep.subr.bf16.mxu0 %v4224_v39 }
 0x6ad   : > { %3737 = vmatmul.mubr.f32.gmra.mrb[36].mxu1 %v2358_v40  ;;  %v2875_v40 = vld [vmem:[%s5024_s6 + $0x10] sm:$0xff] }
 0x6ae   : > { %4002 = vmatpush3.bf16.msra.mxu1 %v4224_v39  ;;  %3771 = vmatprep.mubr.f32.mxu1 %v1879_v41 }
 0x6af   : > { %3980 = vmatpush3.bf16.msra.mxu0 %v4224_v39  ;;  %4003 = vmatprep.subr.bf16.mxu1 %v4224_v39 }
 0x6b0   : > { %3981 = vmatprep.subr.bf16.mxu0 %v4224_v39 }
 0x6b2   : > { %4004 = vmatpush3.bf16.msra.mxu1 %v4224_v39 }
 0x6b3   : > { %3982 = vmatpush3.bf16.msra.mxu0 %v4224_v39  ;;  %4005 = vmatprep.subr.bf16.mxu1 %v4224_v39 }
 0x6b4   : > { %3983 = vmatprep.subr.bf16.mxu0 %v4224_v39 }
 0x6b6   : > { %4006 = vmatpush3.bf16.msra.mxu1 %v4224_v39 }
 0x6b7   : > { %3984 = vmatpush3.bf16.msra.mxu0 %v4224_v39  ;;  %4007 = vmatprep.subr.bf16.mxu1 %v4224_v39 }
 0x6b8   : > { %3985 = vmatprep.subr.bf16.mxu0 %v4224_v39 }
 0x6ba   : > { %4008 = vmatpush3.bf16.msra.mxu1 %v4224_v39 }
 0x6bb   : > { %3986 = vmatpush3.bf16.msra.mxu0 %v4224_v39  ;;  %4009 = vmatprep.subr.bf16.mxu1 %v4224_v39 }
 0x6bc   : > { %3987 = vmatprep.subr.bf16.mxu0 %v4224_v39 }
 0x6be   : > { %4010 = vmatpush3.bf16.msra.mxu1 %v4224_v39 }
 0x6bf   : > { %3988 = vmatpush3.bf16.msra.mxu0 %v4224_v39  ;;  %4011 = vmatprep.subr.bf16.mxu1 %v4224_v39 }
 0x6c0   : > { %3989 = vmatprep.subr.bf16.mxu0 %v4224_v39 }
 0x6c2   : > { %4012 = vmatpush3.bf16.msra.mxu1 %v4224_v39 }
 0x6c3   : > { %3990 = vmatpush3.bf16.msra.mxu0 %v4224_v39  ;;  %4013 = vmatprep.subr.bf16.mxu1 %v4224_v39 }
 0x6c4   : > { %4015 = vmatprep.subr.bf16.mxu0 %v5047_v61 }
 0x6c6   : > { %4014 = vmatpush3.bf16.msra.mxu1 %v4224_v39  ;;  %3710 = vmatmul.mubr.f32.vlgmr.msra.gmra.mrb[34].mxu0 %v4867_v18 }
 0x6c7   : > { %3712 = vmatprep.mubr.f32.mxu0 %v4872_v58  ;;  %4021 = vmatprep.subr.bf16.mxu1 %v5047_v61 }
 0x6c9   : > { %3772 = vmatmul.mubr.f32.vlgmr.msra.gmra.mrb[34].mxu1 %v1880_v34  ;;  %v2882_v34 = vld [vmem:[%s5025_s7 + $0x8] sm:$0xff] }
 0x6ca   : > { %3774 = vmatprep.mubr.f32.mxu1 %v1881_v36  ;;  %3713 = vmatmul.mubr.f32.gmra.mrb[36].mxu0 %v4880_v35 }
 0x6cb   : > { %3785 = vmatprep.mubr.msk.f32.mxu0 %vm4223_vm2, %v5054_v46 }
 0x6cd   : > { %3775 = vmatmul.mubr.f32.gmra.mrb[36].mxu1 %v1882_v9  ;;  %v2881_v9 = vld [vmem:[%s5025_s7] sm:$0xff] }
 0x6ce   : > { %3796 = vmatprep.mubr.msk.f32.mxu1 %vm4223_vm2, %v5054_v46 }
 0x799   : > { %v3711_v21 = vpop.f32.mrb[34].mxu0 }
 0x79a   : > { %v2336_v29 = vpop.f32.mrb[35].mxu0 }
 0x79b   : > { %v4016_v5 = vpack.c.bf16 %v3711_v21, %v2336_v29 }
 0x79c   : > { %v3773_v32 = vpop.f32.mrb[34].mxu1 }
 0x79d   : > { %v2510_v12 = vpop.f32.mrb[35].mxu1  ;;  %v3714_v39 = vpop.f32.mrb[36].mxu0  ;;  %4017 = vmatpush3.bf16.msra.mxu0 %v4016_v5 }
 0x79e   : > { %v4022_v54 = vpack.c.bf16 %v3773_v32, %v2510_v12  ;;  %v2346_v19 = vpop.f32.mrb[37].mxu0  ;;  %4018 = vmatprep.subr.bf16.mxu0 %v5047_v61  ;;  %v2884_v32 = vld [vmem:[%s5025_s7 + $0x18] sm:$0xff]  ;;  %v2883_v12 = vld [vmem:[%s5025_s7 + $0x10] sm:$0xff] }
 0x79f   : > { %v4019_v53 = vpack.c.bf16 %v3714_v39, %v2346_v19 }
 0x7a0   : > { %v3776_v4 = vpop.f32.mrb[36].mxu1  ;;  %4023 = vmatpush3.bf16.msra.mxu1 %v4022_v54 }
 0x7a1   : > { %v2520_v11 = vpop.f32.mrb[37].mxu1  ;;  %4020 = vmatpush3.bf16.msra.mxu0 %v4019_v53  ;;  %4024 = vmatprep.subr.bf16.mxu1 %v5047_v61 }
 0x7a2   : > { %v4025_v22 = vpack.c.bf16 %v3776_v4, %v2520_v11 }
 0x7a4   : > { %4026 = vmatpush3.bf16.msra.mxu1 %v4025_v22  ;;  %3786 = vmatmul.mubr.msk.f32.vlgmr.msra.gmra.mrb[38].mxu0 %vm732_vm1, %v2529_v44 }
 0x7a5   : > { %3801 = vmatprep.mubr.msk.f32.mxu0 %vm2683_vm5, %v2679_v13 }
 0x7a7   : > { %3797 = vmatmul.mubr.msk.f32.vlgmr.msra.gmra.mrb[38].mxu1 %vm732_vm1, %v2529_v44 }
 0x7a8   : > { %3809 = vmatprep.mubr.msk.f32.mxu1 %vm2683_vm5, %v2679_v13 }
 0x877   : > { %v2599_v61 = vpop.f32.mrb[38].mxu0 }
 0x878   : > { %v2603_v7 = vmul.f32 0.000625, %v2599_v61  ;;  %v3787_v48 = vpop.f32.mrb[39].mxu0 }
 0x87a   : > { %v2670_v50 = vpop.f32.mrb[38].mxu1  ;;  %v2675_v33 = vmul.f32 %v2603_v7, %v2603_v7  ;;  %3799 = vmatprep.subr.msk.mxu0 %vm2696_vm6, %v2603_v7 }
 0x87b   : > { %v2674_v37 = vmul.f32 0.000625, %v2670_v50  ;;  %v3798_v45 = vpop.f32.mrb[39].mxu1  ;;  %3800 = vmatpush3.msk.msra.mxu0 %vm2696_vm6, %v2603_v7 }
 0x87c   : > { %3802 = vmatmul.mubr.msk.f32.vlgmr.msra.gmra.mrb[40].mxu0 %vm2683_vm5, %v2680_v49 }
 0x87d   : > { %v2676_v51 = vsub.f32 %v2674_v37, %v2675_v33  ;;  %3804 = vmatprep.mubr.msk.f32.mxu0 %vm2683_vm5, %v2681_v15 }
 0x87f   : > { %v2677_v57 = vadd.f32 1e-05, %v2676_v51 }
 0x880   : > { %3805 = vmatmul.mubr.msk.f32.gmra.mrb[42].mxu0 %vm2683_vm5, %v2682_v52 }
 0x881   : > { %4154 = vrsqrt.f32 %v2677_v57 }
 0x88b   : > { %v4155_v55 = vpop.eup %4154 }
 0x88c   : > { %3807 = vmatprep.subr.msk.mxu1 %vm2696_vm6, %v4155_v55 }
 0x88d   : > { %3808 = vmatpush3.msk.msra.mxu1 %vm2696_vm6, %v4155_v55 }
 0x88e   : > { %3810 = vmatmul.mubr.msk.f32.vlgmr.msra.gmra.mrb[40].mxu1 %vm2683_vm5, %v2680_v49 }
 0x88f   : > { %3812 = vmatprep.mubr.msk.f32.mxu1 %vm2683_vm5, %v2681_v15 }
 0x892   : > { %3813 = vmatmul.mubr.msk.f32.gmra.mrb[42].mxu1 %vm2683_vm5, %v2682_v52 }
 0x94f   : > { %v3803_v31 = vpop.f32.mrb[40].mxu0 }
 0x950   : > { %v2766_v8 = vpop.f32.mrb[41].mxu0 }
 0x953   : > { %v3806_v6 = vpop.f32.mrb[42].mxu0 }
 0x954   : > { %v2776_v59 = vpop.f32.mrb[43].mxu0 }
 0x961   : > { %v3811_v1 = vpop.f32.mrb[40].mxu1 }
 0x962   : > { %v2878_v27 = vmul.f32 %v3811_v1, %v2874_v56  ;;  %v2854_v16 = vpop.f32.mrb[41].mxu1 }
 0x963   : > { %v2877_v14 = vmul.f32 %v2873_v10, %v2854_v16 }
 0x964   : > { %2904 = vperm.xlu0 %4082, %v2878_v27   ;;  %v2886_v38 = vmul.f32 %v3803_v31, %v2878_v27 }
 0x965   : > { %2899 = vperm.xlu1 %4083, %v2877_v14   ;;  %v3814_v41 = vpop.f32.mrb[42].mxu1  ;;  %v2885_v42 = vmul.f32 %v2877_v14, %v2766_v8 }
 0x966   : > { %v2880_v0 = vmul.f32 %v3814_v41, %v2876_v43  ;;  %v2864_v25 = vpop.f32.mrb[43].mxu1  ;;  %v2890_v29 = vsub.f32 %v2882_v34, %v2886_v38 }
 0x967   : > { %v2879_v36 = vmul.f32 %v2875_v40, %v2864_v25  ;;  %v2889_v5 = vsub.f32 %v2881_v9, %v2885_v42 }
 0x968   : > { %2914 = vperm.xlu0 %4082, %v2880_v0   ;;  %v2888_v46 = vmul.f32 %v3806_v6, %v2880_v0 }
 0x969   : > { %2909 = vperm.xlu1 %4083, %v2879_v36   ;;  %v2887_v21 = vmul.f32 %v2879_v36, %v2776_v59 }
 0x96a   : > { %v2892_v39 = vsub.f32 %v2884_v32, %v2888_v46 }
 0x96b   : > { %v2891_v54 = vsub.f32 %v2883_v12, %v2887_v21 }
 0x96c   : > { %2928 = vperm.xlu0 %4082, %v2890_v29  }
 0x96d   : > { %2923 = vperm.xlu1 %4083, %v2889_v5  }
 0x970   : > { %2938 = vperm.xlu0 %4082, %v2892_v39  }
 0x971   : > { %2933 = vperm.xlu1 %4083, %v2891_v54  }
 0x9e3   : > { %v2905_v19 = vpop.permute.xlu0 %2904 }
 0x9e4   : > { %v2900_v53 = vpop.permute.xlu1 %2899  ;;  %v2918_v44 = vmul.f32 %v2905_v19, %v4867_v18  ;;  %v2966_v22 = vmul.f32 %v2905_v19, %v4814_v47 }
 0x9e5   : > { %v2917_v13 = vmul.f32 %v2900_v53, %v4829_v3  ;;  %v2965_v61 = vmul.f32 %v2900_v53, %v4816_v62 }
 0x9e7   : > { %v2915_v4 = vpop.permute.xlu0 %2914 }
 0x9e8   : > { %v2910_v11 = vpop.permute.xlu1 %2909  ;;  %v2920_v49 = vmul.f32 %v2915_v4, %v4880_v35  ;;  %v2968_v15 = vmul.f32 %v2915_v4, %v4824_v2 }
 0x9e9   : > { %v2919_v47 = vmul.f32 %v2910_v11, %v4872_v58  ;;  %v2967_v3 = vmul.f32 %v2910_v11, %v4826_v63 }
 0x9eb   : > { %v2929_v7 = vpop.permute.xlu0 %2928 }
 0x9ec   : > { %v2942_v48 = vadd.f32 %v2929_v7, %v2918_v44  ;;  %v2970_v50 = vadd.f32 %v2966_v22, %v2929_v7  ;;  %v2924_v33 = vpop.permute.xlu1 %2923 }
 0x9ed   : > { %v2941_v37 = vadd.f32 %v2924_v33, %v2917_v13  ;;  %v2969_v45 = vadd.f32 %v2965_v61, %v2924_v33 }
 0x9ee   : > { %v2946_v51 = vmax.f32 %v2942_v48, 0.0  ;;  %v2974_v18 = vmax.f32 %v2970_v50, 0.0 }
 0x9ef   : > { %v2945_v62 = vmax.f32 %v2941_v37, 0.0  ;;  %v2973_v57 = vmax.f32 %v2969_v45, 0.0  ;;  %v2939_v52 = vpop.permute.xlu0 %2938 }
 0x9f0   : > { %v2954_v55 = vadd.f32 %v2946_v51, %v4384_v24  ;;  %v2982_v31 = vadd.f32 %v2974_v18, %v5050_v17  ;;  %v2944_v8 = vadd.f32 %v2939_v52, %v2920_v49  ;;  %v2972_v6 = vadd.f32 %v2968_v15, %v2939_v52  ;;  %v2934_v59 = vpop.permute.xlu1 %2933 }
 0x9f1   : > { %v2953_v35 = vadd.f32 %v2945_v62, %v4380_v20  ;;  %v2981_v2 = vadd.f32 %v2973_v57, %v5051_v60  ;;  %v2943_v56 = vadd.f32 %v2934_v59, %v2919_v47  ;;  %v2971_v10 = vadd.f32 %v2967_v3, %v2934_v59 }
 0x9f2   : > { %2958 = vst [vmem:[%s367_s26 + $0x10] sm:$0xff] %v2954_v55  ;;  %3162 = vst [vmem:[%s367_s26 + $0x18] sm:$0xff] %v2982_v31  ;;  %v2948_v63 = vmax.f32 %v2944_v8, 0.0  ;;  %v2976_v58 = vmax.f32 %v2972_v6, 0.0 }
 0x9f3   : > { %2957 = vst [vmem:[%s367_s26] sm:$0xff] %v2953_v35  ;;  %3161 = vst [vmem:[%s367_s26 + $0x8] sm:$0xff] %v2981_v2  ;;  %v2947_v24 = vmax.f32 %v2943_v56, 0.0  ;;  %v2975_v17 = vmax.f32 %v2971_v10, 0.0 }
 0x9f4   : > { %v2956_v1 = vadd.f32 %v2948_v63, %v4396_v30  ;;  %v2984_v20 = vadd.f32 %v2976_v58, %v5052_v23 }
 0x9f5   : > { %v2955_v60 = vadd.f32 %v2947_v24, %v4392_v28  ;;  %v2983_v27 = vadd.f32 %v2975_v17, %v5053_v26 }
 0x9f6   : > { %2960 = vst [vmem:[%s367_s26 + $0x30] sm:$0xff] %v2956_v1  ;;  %3164 = vst [vmem:[%s367_s26 + $0x38] sm:$0xff] %v2984_v20 }
 0x9f7   : > { %2959 = vst [vmem:[%s367_s26 + $0x20] sm:$0xff] %v2955_v60  ;;  %3163 = vst [vmem:[%s367_s26 + $0x28] sm:$0xff] %v2983_v27 }
 0x9f8   : > { %4169 = shalt.err (!%p4166_p3)
}
 0x9f9   : > { %s4170_s20 = scalar_lea.hbm %s4969_s17, 1024  ;;  %s4174_s28 = scalar_lea.hbm %s5028_s10, 2048 }
 0x9fa   : > { %p4171_p4 = scmp.ne.s32.totalorder %s4969_s17, %s4170_s20  ;;  %p4175_p9 = scmp.lt.u32.totalorder %s4969_s17, %s5028_s10 }
 0x9fb   : > { %p4176_p10 = scmp.lt.u32.totalorder %s4174_s28, %s4170_s20  ;;  %p4178_p12 = scmp.lt.u32.totalorder %s4170_s20, %s4969_s17 }
 0x9fc   : > { %p4172_p7 = pnand %p4171_p4, %p4322_p5 }
 0x9fd   : > { %p4177_p11 = por %p4176_p10, %p4175_p9 }
 0x9fe   : > { %p4173_p8 = pneg %p4172_p7 }
 0x9ff   : > { %p4179_p13 = por %p4178_p12, %p4177_p11 }
 0xa01   : > { %p4180_p0 = pnand %p4179_p13, %p4173_p8 }
 0xa03   : > { %4183 = shalt.err (!%p4180_p0)
}
 0xa04   : > { %s4227_s11 = smov 256   ;;  %s4228_s18 = smov 16  }
 0xa05   : > { %4035 = dma.vmem_to_hbm [thread:$0]  (%p4322_p5), %s4971_s27, 1024, %s4969_s17, %s4977_s30, %s4227_s11, %s4227_s11, %s4228_s18  }
 0xa06 PF: > { %p4041_p1 = scmp.ge.s32.totalorder %s4218_s16, 2  ;;  %s3018_s21 = sand.u32 1, %s4206_s13  }
 0xa07   : > { %s3019_s20 = scalar_lea.sflag [#allocation7], %s3018_s21 }
 0xa08   : > { %p4038_p2 = pnand %p4041_p1, %p4326_p6 }
 0xa0a   : > { %4201 = dma.done.wait (!%p4038_p2), %s3019_s20, 1024  }
 0xa0b   : > { %4203 = vsyncadd (!%p4038_p2), %s3019_s20, 4294966272  ;;  %p20_p3 = scmp.ge.s32.totalorder %s4309_s19, 4   ;;  %s5055_s13 = smov %s4210_s14 }
 0xa0c   : > { %s5056_s14 = smov %s4214_s15  ;;  %s5057_s15 = smov %s4320_s22 }
 0xa0d   : > { %s5058_s16 = smov %s4309_s19  ;;  %22 = sbr.rel (!%p20_p3) target bundleno = 3 (0x3), region = 102 }
 0xa14   :  { %3024 = vsyncpa [#allocation7], 1 }
 0xa15   :  { %3026 = vsyncpa [#allocation7 + $0x1], 1 }

</bundles_post_ra>
